<compile_context>
chip_gen: v6e
topology: v6e:2x2x1
jax: 0.10.0
libtpu: 0.0.40
codegen_flags: <defaults>
</compile_context>

<pallas_src>
import functools

import numpy as np
import jax
import jax.numpy as jnp
from jax.experimental import pallas as pl
from jax.experimental.pallas import tpu as pltpu

EPS = 1e-5          # nn.InstanceNorm2d default eps (affine=False)
NEG_SLOPE = 0.01    # nn.LeakyReLU default negative_slope


# ----------------------------------------------------------------------------
# Trace-time constants (built with numpy -> compile-time literals)
# ----------------------------------------------------------------------------
def _phase_matrices(H, W):
    """0/1 matrices mapping the pooled-resolution flat index j=(h2,w2) to the
    full-resolution flat index m=(2*h2+ky)*W + (2*w2+kx) for the four 2x2
    phases t = ky*2+kx.  scat[t] is (M2, M); gath[t] = scat[t]^T is (M, M2)."""
    H2, W2 = H // 2, W // 2
    M, M2 = H * W, H2 * W2
    scat = np.zeros((4, M2, M), np.float32)
    for ky in range(2):
        for kx in range(2):
            t = ky * 2 + kx
            for j in range(M2):
                h2, w2 = j // W2, j % W2
                m = (2 * h2 + ky) * W + (2 * w2 + kx)
                scat[t, j, m] = 1.0
    gath = np.ascontiguousarray(np.transpose(scat, (0, 2, 1)))
    return jnp.asarray(gath), jnp.asarray(scat)


def _tap_masks(H2, W2):
    """(9, 1, M2) 0/1 validity masks for the 3x3 conv taps (dy, dx) on the
    zero-padded (padding=1) pooled image."""
    M2 = H2 * W2
    j = np.arange(M2)
    h2, w2 = j // W2, j % W2
    masks = np.zeros((9, 1, M2), np.float32)
    for ky in range(3):
        for kx in range(3):
            dy, dx = ky - 1, kx - 1
            ok = ((h2 + dy >= 0) & (h2 + dy < H2) &
                  (w2 + dx >= 0) & (w2 + dx < W2))
            masks[ky * 3 + kx, 0, :] = ok.astype(np.float32)
    return jnp.asarray(masks)


# ----------------------------------------------------------------------------
# Fused kernel: one sample per grid step, all intermediates stay in VMEM/vregs
# ----------------------------------------------------------------------------
def _unet_innermost_kernel(H2, W2, cin, cout,
                           x_ref, gath_ref, scat_ref, mask_ref,
                           w1_ref, w2_ref, wt_ref, bt_ref,
                           out_ref, pad_ref):
    M2 = H2 * W2
    P = W2 + 1                         # left pad of the flat padded scratch

    # Zero the padded scratch once per sample (padding columns must read 0).
    pad_ref[...] = jnp.zeros(pad_ref.shape, pad_ref.dtype)

    x = x_ref[0]                       # (cin, M) lane-dense slab

    # ---- skip connection: channels [0:cin) of the output are x itself -----
    out_ref[0, 0:cin, :] = x

    # ---- MaxPool2d(2, 2): max over the four 2x2 phases (exact 0/1 gather) --
    pooled = jnp.dot(x, gath_ref[0], preferred_element_type=jnp.float32)
    for t in range(1, 4):
        pooled = jnp.maximum(
            pooled, jnp.dot(x, gath_ref[t], preferred_element_type=jnp.float32))
    # pooled: (cin, M2)

    def conv3x3_in_lrelu(a, w_ref, c_in, c_out):
        # Conv2d(k=3, pad=1): 9 taps read as shifted slices of the zero-padded
        # VMEM scratch, masked at the image border, accumulated with matmuls.
        # Conv bias is omitted: it is exactly cancelled by the affine=False
        # InstanceNorm2d that follows.
        pad_ref[0:c_in, P:P + M2] = a
        acc = jnp.zeros((c_out, M2), jnp.float32)
        for ky in range(3):
            for kx in range(3):
                t = ky * 3 + kx
                d = (ky - 1) * W2 + (kx - 1)
                sh = pad_ref[0:c_in, P + d:P + d + M2] * mask_ref[t]
                acc = acc + jnp.dot(w_ref[t], sh,
                                    preferred_element_type=jnp.float32)
        # InstanceNorm2d (affine=False), single-pass statistics over spatial.
        inv_m2 = 1.0 / M2
        mean = jnp.sum(acc, axis=1, keepdims=True) * inv_m2
        var = jnp.sum(acc * acc, axis=1, keepdims=True) * inv_m2 - mean * mean
        yn = (acc - mean) * jax.lax.rsqrt(jnp.maximum(var, 0.0) + EPS)
        # LeakyReLU(0.01)
        return jnp.where(yn >= 0, yn, NEG_SLOPE * yn)

    h1 = conv3x3_in_lrelu(pooled, w1_ref, cin, cout)     # (cout, M2)
    h2 = conv3x3_in_lrelu(h1, w2_ref, cout, cout)        # (cout, M2)

    # ---- ConvTranspose2d(cout, cin, 2, stride=2): per-phase matmul, then ----
    # ---- exact 0/1 scatter back to the full-resolution lane layout + bias --
    up = jnp.zeros((cin, 4 * M2), jnp.float32)
    for t in range(4):
        z = jnp.dot(wt_ref[t], h2, preferred_element_type=jnp.float32)  # (cin, M2)
        up = up + jnp.dot(z, scat_ref[t], preferred_element_type=jnp.float32)
    up = up + bt_ref[...]                                # (cin, 1) broadcast
    # center_crop is the identity here (even H, W): write channels [cin:2cin).
    out_ref[0, cin:2 * cin, :] = up


# ----------------------------------------------------------------------------
# Wrapper: layout-only glue (free reshapes + tiny weight repacking)
# ----------------------------------------------------------------------------
def unet_innermost_forward(x, params):
    N, Cin, H, W = x.shape
    Cout = params["w1"].shape[0]
    assert Cout == 2 * Cin, "innermost block requires out_channels == 2*in_channels"
    assert H % 2 == 0 and W % 2 == 0, "innermost block requires even spatial dims"
    H2, W2 = H // 2, W // 2
    M, M2 = H * W, H2 * W2

    gath, scat = _phase_matrices(H, W)            # (4, M, M2), (4, M2, M)
    masks = _tap_masks(H2, W2)                    # (9, 1, M2)

    # Weight repacking (tiny, done once under jit).
    w1m = jnp.transpose(params["w1"], (2, 3, 0, 1)).reshape(9, Cout, Cin)
    w2m = jnp.transpose(params["w2"], (2, 3, 0, 1)).reshape(9, Cout, Cout)
    wtm = jnp.transpose(params["wt"], (2, 3, 1, 0)).reshape(4, Cin, Cout)
    btm = params["bt"].reshape(Cin, 1).astype(jnp.float32)
    # NOTE: b1 / b2 are mathematically cancelled by the affine=False
    # InstanceNorm2d that follows each conv, so they are not passed in.

    x2 = x.astype(jnp.float32).reshape(N, Cin, M)  # free reshape, no transpose

    kernel = functools.partial(_unet_innermost_kernel, H2, W2, Cin, Cout)

    def const_spec(shape):
        return pl.BlockSpec(shape, lambda n, _s=shape: (0,) * len(_s))

    out = pl.pallas_call(
        kernel,
        out_shape=jax.ShapeDtypeStruct((N, 2 * Cin, M), jnp.float32),
        grid=(N,),
        in_specs=[
            pl.BlockSpec((1, Cin, M), lambda n: (n, 0, 0)),   # x (per sample)
            const_spec((4, M, M2)),                            # pool gather
            const_spec((4, M2, M)),                            # upconv scatter
            const_spec((9, 1, M2)),                            # tap border masks
            const_spec((9, Cout, Cin)),                        # conv1 weights
            const_spec((9, Cout, Cout)),                       # conv2 weights
            const_spec((4, Cin, Cout)),                        # upconv weights
            const_spec((Cin, 1)),                              # upconv bias
        ],
        out_specs=pl.BlockSpec((1, 2 * Cin, M), lambda n: (n, 0, 0)),
        scratch_shapes=[pltpu.VMEM((Cout, M2 + 2 * (W2 + 1)), jnp.float32)],
        compiler_params=pltpu.CompilerParams(
            dimension_semantics=("parallel",)),
    )(x2, gath, scat, masks, w1m, w2m, wtm, btm)

    return out.reshape(N, 2 * Cin, H, W)


# ----------------------------------------------------------------------------
# Pure-JAX reference (PyTorch semantics) for verification
# ----------------------------------------------------------------------------
def _center_crop(layer, target_h, target_w):
    _, _, lh, lw = layer.shape
    y1 = (lh - target_h) // 2
    x1 = (lw - target_w) // 2
    return layer[:, :, y1:y1 + target_h, x1:x1 + target_w]


def ref_forward(x, p):
    N, Cin, H, W = x.shape
    pooled = jax.lax.reduce_window(x, -jnp.inf, jax.lax.max,
                                   (1, 1, 2, 2), (1, 1, 2, 2), "VALID")

    def conv3(inp, w, b):
        y = jax.lax.conv_general_dilated(
            inp, w, window_strides=(1, 1), padding=((1, 1), (1, 1)),
            dimension_numbers=("NCHW", "OIHW", "NCHW"),
            precision=jax.lax.Precision.HIGHEST)
        return y + b[None, :, None, None]

    def inorm(y):
        m = jnp.mean(y, axis=(2, 3), keepdims=True)
        v = jnp.mean((y - m) ** 2, axis=(2, 3), keepdims=True)
        return (y - m) / jnp.sqrt(v + EPS)

    def lrelu(y):
        return jnp.where(y >= 0, y, NEG_SLOPE * y)

    y = lrelu(inorm(conv3(pooled, p["w1"], p["b1"])))
    y = lrelu(inorm(conv3(y, p["w2"], p["b2"])))
    Cup = p["wt"].shape[1]
    H2, W2 = y.shape[2], y.shape[3]
    up = jnp.einsum("nchw,cokl->nohkwl", y, p["wt"],
                    precision=jax.lax.Precision.HIGHEST)
    up = up.reshape(N, Cup, 2 * H2, 2 * W2) + p["bt"][None, :, None, None]
    crop = _center_crop(up, H, W)
    return jnp.concatenate([x, crop], axis=1)


# ----------------------------------------------------------------------------
if __name__ == "__main__":
    key = jax.random.PRNGKey(0)
    in_channels, out_channels = 4, 8     # innermost: out_channels = 2 * in_channels
    N, H, W = 2, 16, 16
    ks = jax.random.split(key, 7)

    x = jax.random.normal(ks[0], (N, in_channels, H, W), jnp.float32)
    params = dict(
        w1=0.1 * jax.random.normal(ks[1], (out_channels, in_channels, 3, 3), jnp.float32),
        b1=0.01 * jax.random.normal(ks[2], (out_channels,), jnp.float32),
        w2=0.1 * jax.random.normal(ks[3], (out_channels, out_channels, 3, 3), jnp.float32),
        b2=0.01 * jax.random.normal(ks[4], (out_channels,), jnp.float32),
        wt=0.1 * jax.random.normal(ks[5], (in_channels * 2, in_channels, 2, 2), jnp.float32),
        bt=0.01 * jax.random.normal(ks[6], (in_channels,), jnp.float32),
    )

    out = jax.block_until_ready(jax.jit(unet_innermost_forward)(x, params))
    assert out.shape == (N, 2 * in_channels, H, W), out.shape

    ref = jax.block_until_ready(ref_forward(x, params))
    max_err = float(jnp.max(jnp.abs(out - ref)))
    assert max_err < 2e-2, f"mismatch vs reference: {max_err}"

    print("KERNEL_OK")
</pallas_src>

<mosaic_0001>
module attributes {stable_mosaic.version = 11 : i64} {
  func.func @_unet_innermost_kernel(%arg0: i32, %arg1: memref<1x4x256xf32, #tpu.memory_space<vmem>>, %arg2: memref<4x256x64xf32, #tpu.memory_space<vmem>>, %arg3: memref<4x64x256xf32, #tpu.memory_space<vmem>>, %arg4: memref<9x1x64xf32, #tpu.memory_space<vmem>>, %arg5: memref<9x8x4xf32, #tpu.memory_space<vmem>>, %arg6: memref<9x8x8xf32, #tpu.memory_space<vmem>>, %arg7: memref<4x4x8xf32, #tpu.memory_space<vmem>>, %arg8: memref<4x1xf32, #tpu.memory_space<vmem>>, %arg9: memref<1x8x256xf32, #tpu.memory_space<vmem>>, %arg10: memref<8x82xf32, #tpu.memory_space<vmem>>) attributes {dimension_semantics = [#tpu.dimension_semantics<parallel>], iteration_bounds = array<i64: 2>, scalar_prefetch = 0 : i64, scratch_operands = 1 : i64, tpu.core_type = #tpu.core_type<tc>, window_params = [{transform_indices = @transform_0, window_bounds = array<i64: 1, 4, 256>}, {pipeline_mode = #tpu.pipeline_mode<synchronous>, transform_indices = @transform_1, window_bounds = array<i64: 4, 256, 64>}, {pipeline_mode = #tpu.pipeline_mode<synchronous>, transform_indices = @transform_2, window_bounds = array<i64: 4, 64, 256>}, {pipeline_mode = #tpu.pipeline_mode<synchronous>, transform_indices = @transform_3, window_bounds = array<i64: 9, 1, 64>}, {pipeline_mode = #tpu.pipeline_mode<synchronous>, transform_indices = @transform_4, window_bounds = array<i64: 9, 8, 4>}, {pipeline_mode = #tpu.pipeline_mode<synchronous>, transform_indices = @transform_5, window_bounds = array<i64: 9, 8, 8>}, {pipeline_mode = #tpu.pipeline_mode<synchronous>, transform_indices = @transform_6, window_bounds = array<i64: 4, 4, 8>}, {pipeline_mode = #tpu.pipeline_mode<synchronous>, transform_indices = @transform_7, window_bounds = array<i64: 4, 1>}, {transform_indices = @transform_8, window_bounds = array<i64: 1, 8, 256>}]} {
    %cst = arith.constant 0.000000e+00 : f32
    %0 = vector.broadcast %cst : f32 to vector<8x82xf32>
    %c0 = arith.constant 0 : index
    %c0_0 = arith.constant 0 : index
    %1 = vector.load %arg10[%c0, %c0_0] : memref<8x82xf32, #tpu.memory_space<vmem>>, vector<8x82xf32>
    tpu.vector_store %arg10[%c0, %c0_0], %0 {strides = array<i32>} : memref<8x82xf32, #tpu.memory_space<vmem>>, vector<8x82xf32>,
    %c0_1 = arith.constant 0 : index
    %c0_2 = arith.constant 0 : index
    %c0_3 = arith.constant 0 : index
    %2 = vector.load %arg1[%c0_1, %c0_2, %c0_3] : memref<1x4x256xf32, #tpu.memory_space<vmem>>, vector<1x4x256xf32>
    %3 = vector.shape_cast %2 : vector<1x4x256xf32> to vector<4x256xf32>
    %c0_4 = arith.constant 0 : index
    %c0_5 = arith.constant 0 : index
    %c0_6 = arith.constant 0 : index
    %4 = vector.load %arg9[%c0_4, %c0_5, %c0_6] : memref<1x8x256xf32, #tpu.memory_space<vmem>>, vector<1x4x256xf32>
    %5 = vector.shape_cast %4 : vector<1x4x256xf32> to vector<4x256xf32>
    %6 = vector.shape_cast %3 : vector<4x256xf32> to vector<1x4x256xf32>
    tpu.vector_store %arg9[%c0_4, %c0_5, %c0_6], %6 {strides = array<i32>} : memref<1x8x256xf32, #tpu.memory_space<vmem>>, vector<1x4x256xf32>,
    %c0_7 = arith.constant 0 : index
    %c0_8 = arith.constant 0 : index
    %c0_9 = arith.constant 0 : index
    %7 = vector.load %arg2[%c0_7, %c0_8, %c0_9] : memref<4x256x64xf32, #tpu.memory_space<vmem>>, vector<1x256x64xf32>
    %8 = vector.shape_cast %7 : vector<1x256x64xf32> to vector<256x64xf32>
    %cst_10 = arith.constant dense<0.000000e+00> : vector<4x64xf32>
    %9 = tpu.matmul %3, %8, %cst_10 {dimension_numbers = #tpu.dot_dimension_numbers<[1], [0], [0], [1], [0, 0, 1, 1], [], []>} : vector<4x256xf32>, vector<256x64xf32>, vector<4x64xf32> -> vector<4x64xf32>
    %c1 = arith.constant 1 : index
    %c0_11 = arith.constant 0 : index
    %c0_12 = arith.constant 0 : index
    %10 = vector.load %arg2[%c1, %c0_11, %c0_12] : memref<4x256x64xf32, #tpu.memory_space<vmem>>, vector<1x256x64xf32>
    %11 = vector.shape_cast %10 : vector<1x256x64xf32> to vector<256x64xf32>
    %cst_13 = arith.constant dense<0.000000e+00> : vector<4x64xf32>
    %12 = tpu.matmul %3, %11, %cst_13 {dimension_numbers = #tpu.dot_dimension_numbers<[1], [0], [0], [1], [0, 0, 1, 1], [], []>} : vector<4x256xf32>, vector<256x64xf32>, vector<4x64xf32> -> vector<4x64xf32>
    %13 = arith.maximumf %9, %12 : vector<4x64xf32>
    %c2 = arith.constant 2 : index
    %c0_14 = arith.constant 0 : index
    %c0_15 = arith.constant 0 : index
    %14 = vector.load %arg2[%c2, %c0_14, %c0_15] : memref<4x256x64xf32, #tpu.memory_space<vmem>>, vector<1x256x64xf32>
    %15 = vector.shape_cast %14 : vector<1x256x64xf32> to vector<256x64xf32>
    %cst_16 = arith.constant dense<0.000000e+00> : vector<4x64xf32>
    %16 = tpu.matmul %3, %15, %cst_16 {dimension_numbers = #tpu.dot_dimension_numbers<[1], [0], [0], [1], [0, 0, 1, 1], [], []>} : vector<4x256xf32>, vector<256x64xf32>, vector<4x64xf32> -> vector<4x64xf32>
    %17 = arith.maximumf %13, %16 : vector<4x64xf32>
    %c3 = arith.constant 3 : index
    %c0_17 = arith.constant 0 : index
    %c0_18 = arith.constant 0 : index
    %18 = vector.load %arg2[%c3, %c0_17, %c0_18] : memref<4x256x64xf32, #tpu.memory_space<vmem>>, vector<1x256x64xf32>
    %19 = vector.shape_cast %18 : vector<1x256x64xf32> to vector<256x64xf32>
    %cst_19 = arith.constant dense<0.000000e+00> : vector<4x64xf32>
    %20 = tpu.matmul %3, %19, %cst_19 {dimension_numbers = #tpu.dot_dimension_numbers<[1], [0], [0], [1], [0, 0, 1, 1], [], []>} : vector<4x256xf32>, vector<256x64xf32>, vector<4x64xf32> -> vector<4x64xf32>
    %21 = arith.maximumf %17, %20 : vector<4x64xf32>
    %c0_20 = arith.constant 0 : index
    %c9 = arith.constant 9 : index
    %22 = vector.load %arg10[%c0_20, %c9] : memref<8x82xf32, #tpu.memory_space<vmem>>, vector<4x64xf32>
    tpu.vector_store %arg10[%c0_20, %c9], %21 {strides = array<i32>} : memref<8x82xf32, #tpu.memory_space<vmem>>, vector<4x64xf32>,
    %cst_21 = arith.constant 0.000000e+00 : f32
    %23 = vector.broadcast %cst_21 : f32 to vector<8x64xf32>
    %c0_22 = arith.constant 0 : index
    %c0_23 = arith.constant 0 : index
    %24 = vector.load %arg10[%c0_22, %c0_23] : memref<8x82xf32, #tpu.memory_space<vmem>>, vector<4x64xf32>
    %c0_24 = arith.constant 0 : index
    %c0_25 = arith.constant 0 : index
    %c0_26 = arith.constant 0 : index
    %25 = vector.load %arg4[%c0_24, %c0_25, %c0_26] : memref<9x1x64xf32, #tpu.memory_space<vmem>>, vector<1x1x64xf32>
    %26 = vector.shape_cast %25 : vector<1x1x64xf32> to vector<1x64xf32>
    %27 = vector.broadcast %26 : vector<1x64xf32> to vector<4x64xf32>
    %28 = arith.mulf %24, %27 : vector<4x64xf32>
    %c0_27 = arith.constant 0 : index
    %c0_28 = arith.constant 0 : index
    %c0_29 = arith.constant 0 : index
    %29 = vector.load %arg5[%c0_27, %c0_28, %c0_29] : memref<9x8x4xf32, #tpu.memory_space<vmem>>, vector<1x8x4xf32>
    %30 = vector.shape_cast %29 : vector<1x8x4xf32> to vector<8x4xf32>
    %cst_30 = arith.constant dense<0.000000e+00> : vector<8x64xf32>
    %31 = tpu.matmul %30, %28, %cst_30 {dimension_numbers = #tpu.dot_dimension_numbers<[1], [0], [0], [1], [0, 0, 1, 1], [], []>} : vector<8x4xf32>, vector<4x64xf32>, vector<8x64xf32> -> vector<8x64xf32>
    %32 = arith.addf %23, %31 : vector<8x64xf32>
    %c0_31 = arith.constant 0 : index
    %c1_32 = arith.constant 1 : index
    %33 = vector.load %arg10[%c0_31, %c1_32] : memref<8x82xf32, #tpu.memory_space<vmem>>, vector<4x64xf32>
    %c1_33 = arith.constant 1 : index
    %c0_34 = arith.constant 0 : index
    %c0_35 = arith.constant 0 : index
    %34 = vector.load %arg4[%c1_33, %c0_34, %c0_35] : memref<9x1x64xf32, #tpu.memory_space<vmem>>, vector<1x1x64xf32>
    %35 = vector.shape_cast %34 : vector<1x1x64xf32> to vector<1x64xf32>
    %36 = vector.broadcast %35 : vector<1x64xf32> to vector<4x64xf32>
    %37 = arith.mulf %33, %36 : vector<4x64xf32>
    %c1_36 = arith.constant 1 : index
    %c0_37 = arith.constant 0 : index
    %c0_38 = arith.constant 0 : index
    %38 = vector.load %arg5[%c1_36, %c0_37, %c0_38] : memref<9x8x4xf32, #tpu.memory_space<vmem>>, vector<1x8x4xf32>
    %39 = vector.shape_cast %38 : vector<1x8x4xf32> to vector<8x4xf32>
    %cst_39 = arith.constant dense<0.000000e+00> : vector<8x64xf32>
    %40 = tpu.matmul %39, %37, %cst_39 {dimension_numbers = #tpu.dot_dimension_numbers<[1], [0], [0], [1], [0, 0, 1, 1], [], []>} : vector<8x4xf32>, vector<4x64xf32>, vector<8x64xf32> -> vector<8x64xf32>
    %41 = arith.addf %32, %40 : vector<8x64xf32>
    %c0_40 = arith.constant 0 : index
    %c2_41 = arith.constant 2 : index
    %42 = vector.load %arg10[%c0_40, %c2_41] : memref<8x82xf32, #tpu.memory_space<vmem>>, vector<4x64xf32>
    %c2_42 = arith.constant 2 : index
    %c0_43 = arith.constant 0 : index
    %c0_44 = arith.constant 0 : index
    %43 = vector.load %arg4[%c2_42, %c0_43, %c0_44] : memref<9x1x64xf32, #tpu.memory_space<vmem>>, vector<1x1x64xf32>
    %44 = vector.shape_cast %43 : vector<1x1x64xf32> to vector<1x64xf32>
    %45 = vector.broadcast %44 : vector<1x64xf32> to vector<4x64xf32>
    %46 = arith.mulf %42, %45 : vector<4x64xf32>
    %c2_45 = arith.constant 2 : index
    %c0_46 = arith.constant 0 : index
    %c0_47 = arith.constant 0 : index
    %47 = vector.load %arg5[%c2_45, %c0_46, %c0_47] : memref<9x8x4xf32, #tpu.memory_space<vmem>>, vector<1x8x4xf32>
    %48 = vector.shape_cast %47 : vector<1x8x4xf32> to vector<8x4xf32>
    %cst_48 = arith.constant dense<0.000000e+00> : vector<8x64xf32>
    %49 = tpu.matmul %48, %46, %cst_48 {dimension_numbers = #tpu.dot_dimension_numbers<[1], [0], [0], [1], [0, 0, 1, 1], [], []>} : vector<8x4xf32>, vector<4x64xf32>, vector<8x64xf32> -> vector<8x64xf32>
    %50 = arith.addf %41, %49 : vector<8x64xf32>
    %c0_49 = arith.constant 0 : index
    %c8 = arith.constant 8 : index
    %51 = vector.load %arg10[%c0_49, %c8] : memref<8x82xf32, #tpu.memory_space<vmem>>, vector<4x64xf32>
    %c3_50 = arith.constant 3 : index
    %c0_51 = arith.constant 0 : index
    %c0_52 = arith.constant 0 : index
    %52 = vector.load %arg4[%c3_50, %c0_51, %c0_52] : memref<9x1x64xf32, #tpu.memory_space<vmem>>, vector<1x1x64xf32>
    %53 = vector.shape_cast %52 : vector<1x1x64xf32> to vector<1x64xf32>
    %54 = vector.broadcast %53 : vector<1x64xf32> to vector<4x64xf32>
    %55 = arith.mulf %51, %54 : vector<4x64xf32>
    %c3_53 = arith.constant 3 : index
    %c0_54 = arith.constant 0 : index
    %c0_55 = arith.constant 0 : index
    %56 = vector.load %arg5[%c3_53, %c0_54, %c0_55] : memref<9x8x4xf32, #tpu.memory_space<vmem>>, vector<1x8x4xf32>
    %57 = vector.shape_cast %56 : vector<1x8x4xf32> to vector<8x4xf32>
    %cst_56 = arith.constant dense<0.000000e+00> : vector<8x64xf32>
    %58 = tpu.matmul %57, %55, %cst_56 {dimension_numbers = #tpu.dot_dimension_numbers<[1], [0], [0], [1], [0, 0, 1, 1], [], []>} : vector<8x4xf32>, vector<4x64xf32>, vector<8x64xf32> -> vector<8x64xf32>
    %59 = arith.addf %50, %58 : vector<8x64xf32>
    %c0_57 = arith.constant 0 : index
    %c9_58 = arith.constant 9 : index
    %60 = vector.load %arg10[%c0_57, %c9_58] : memref<8x82xf32, #tpu.memory_space<vmem>>, vector<4x64xf32>
    %c4 = arith.constant 4 : index
    %c0_59 = arith.constant 0 : index
    %c0_60 = arith.constant 0 : index
    %61 = vector.load %arg4[%c4, %c0_59, %c0_60] : memref<9x1x64xf32, #tpu.memory_space<vmem>>, vector<1x1x64xf32>
    %62 = vector.shape_cast %61 : vector<1x1x64xf32> to vector<1x64xf32>
    %63 = vector.broadcast %62 : vector<1x64xf32> to vector<4x64xf32>
    %64 = arith.mulf %60, %63 : vector<4x64xf32>
    %c4_61 = arith.constant 4 : index
    %c0_62 = arith.constant 0 : index
    %c0_63 = arith.constant 0 : index
    %65 = vector.load %arg5[%c4_61, %c0_62, %c0_63] : memref<9x8x4xf32, #tpu.memory_space<vmem>>, vector<1x8x4xf32>
    %66 = vector.shape_cast %65 : vector<1x8x4xf32> to vector<8x4xf32>
    %cst_64 = arith.constant dense<0.000000e+00> : vector<8x64xf32>
    %67 = tpu.matmul %66, %64, %cst_64 {dimension_numbers = #tpu.dot_dimension_numbers<[1], [0], [0], [1], [0, 0, 1, 1], [], []>} : vector<8x4xf32>, vector<4x64xf32>, vector<8x64xf32> -> vector<8x64xf32>
    %68 = arith.addf %59, %67 : vector<8x64xf32>
    %c0_65 = arith.constant 0 : index
    %c10 = arith.constant 10 : index
    %69 = vector.load %arg10[%c0_65, %c10] : memref<8x82xf32, #tpu.memory_space<vmem>>, vector<4x64xf32>
    %c5 = arith.constant 5 : index
    %c0_66 = arith.constant 0 : index
    %c0_67 = arith.constant 0 : index
    %70 = vector.load %arg4[%c5, %c0_66, %c0_67] : memref<9x1x64xf32, #tpu.memory_space<vmem>>, vector<1x1x64xf32>
    %71 = vector.shape_cast %70 : vector<1x1x64xf32> to vector<1x64xf32>
    %72 = vector.broadcast %71 : vector<1x64xf32> to vector<4x64xf32>
    %73 = arith.mulf %69, %72 : vector<4x64xf32>
    %c5_68 = arith.constant 5 : index
    %c0_69 = arith.constant 0 : index
    %c0_70 = arith.constant 0 : index
    %74 = vector.load %arg5[%c5_68, %c0_69, %c0_70] : memref<9x8x4xf32, #tpu.memory_space<vmem>>, vector<1x8x4xf32>
    %75 = vector.shape_cast %74 : vector<1x8x4xf32> to vector<8x4xf32>
    %cst_71 = arith.constant dense<0.000000e+00> : vector<8x64xf32>
    %76 = tpu.matmul %75, %73, %cst_71 {dimension_numbers = #tpu.dot_dimension_numbers<[1], [0], [0], [1], [0, 0, 1, 1], [], []>} : vector<8x4xf32>, vector<4x64xf32>, vector<8x64xf32> -> vector<8x64xf32>
    %77 = arith.addf %68, %76 : vector<8x64xf32>
    %c0_72 = arith.constant 0 : index
    %c16 = arith.constant 16 : index
    %78 = vector.load %arg10[%c0_72, %c16] : memref<8x82xf32, #tpu.memory_space<vmem>>, vector<4x64xf32>
    %c6 = arith.constant 6 : index
    %c0_73 = arith.constant 0 : index
    %c0_74 = arith.constant 0 : index
    %79 = vector.load %arg4[%c6, %c0_73, %c0_74] : memref<9x1x64xf32, #tpu.memory_space<vmem>>, vector<1x1x64xf32>
    %80 = vector.shape_cast %79 : vector<1x1x64xf32> to vector<1x64xf32>
    %81 = vector.broadcast %80 : vector<1x64xf32> to vector<4x64xf32>
    %82 = arith.mulf %78, %81 : vector<4x64xf32>
    %c6_75 = arith.constant 6 : index
    %c0_76 = arith.constant 0 : index
    %c0_77 = arith.constant 0 : index
    %83 = vector.load %arg5[%c6_75, %c0_76, %c0_77] : memref<9x8x4xf32, #tpu.memory_space<vmem>>, vector<1x8x4xf32>
    %84 = vector.shape_cast %83 : vector<1x8x4xf32> to vector<8x4xf32>
    %cst_78 = arith.constant dense<0.000000e+00> : vector<8x64xf32>
    %85 = tpu.matmul %84, %82, %cst_78 {dimension_numbers = #tpu.dot_dimension_numbers<[1], [0], [0], [1], [0, 0, 1, 1], [], []>} : vector<8x4xf32>, vector<4x64xf32>, vector<8x64xf32> -> vector<8x64xf32>
    %86 = arith.addf %77, %85 : vector<8x64xf32>
    %c0_79 = arith.constant 0 : index
    %c17 = arith.constant 17 : index
    %87 = vector.load %arg10[%c0_79, %c17] : memref<8x82xf32, #tpu.memory_space<vmem>>, vector<4x64xf32>
    %c7 = arith.constant 7 : index
    %c0_80 = arith.constant 0 : index
    %c0_81 = arith.constant 0 : index
    %88 = vector.load %arg4[%c7, %c0_80, %c0_81] : memref<9x1x64xf32, #tpu.memory_space<vmem>>, vector<1x1x64xf32>
    %89 = vector.shape_cast %88 : vector<1x1x64xf32> to vector<1x64xf32>
    %90 = vector.broadcast %89 : vector<1x64xf32> to vector<4x64xf32>
    %91 = arith.mulf %87, %90 : vector<4x64xf32>
    %c7_82 = arith.constant 7 : index
    %c0_83 = arith.constant 0 : index
    %c0_84 = arith.constant 0 : index
    %92 = vector.load %arg5[%c7_82, %c0_83, %c0_84] : memref<9x8x4xf32, #tpu.memory_space<vmem>>, vector<1x8x4xf32>
    %93 = vector.shape_cast %92 : vector<1x8x4xf32> to vector<8x4xf32>
    %cst_85 = arith.constant dense<0.000000e+00> : vector<8x64xf32>
    %94 = tpu.matmul %93, %91, %cst_85 {dimension_numbers = #tpu.dot_dimension_numbers<[1], [0], [0], [1], [0, 0, 1, 1], [], []>} : vector<8x4xf32>, vector<4x64xf32>, vector<8x64xf32> -> vector<8x64xf32>
    %95 = arith.addf %86, %94 : vector<8x64xf32>
    %c0_86 = arith.constant 0 : index
    %c18 = arith.constant 18 : index
    %96 = vector.load %arg10[%c0_86, %c18] : memref<8x82xf32, #tpu.memory_space<vmem>>, vector<4x64xf32>
    %c8_87 = arith.constant 8 : index
    %c0_88 = arith.constant 0 : index
    %c0_89 = arith.constant 0 : index
    %97 = vector.load %arg4[%c8_87, %c0_88, %c0_89] : memref<9x1x64xf32, #tpu.memory_space<vmem>>, vector<1x1x64xf32>
    %98 = vector.shape_cast %97 : vector<1x1x64xf32> to vector<1x64xf32>
    %99 = vector.broadcast %98 : vector<1x64xf32> to vector<4x64xf32>
    %100 = arith.mulf %96, %99 : vector<4x64xf32>
    %c8_90 = arith.constant 8 : index
    %c0_91 = arith.constant 0 : index
    %c0_92 = arith.constant 0 : index
    %101 = vector.load %arg5[%c8_90, %c0_91, %c0_92] : memref<9x8x4xf32, #tpu.memory_space<vmem>>, vector<1x8x4xf32>
    %102 = vector.shape_cast %101 : vector<1x8x4xf32> to vector<8x4xf32>
    %cst_93 = arith.constant dense<0.000000e+00> : vector<8x64xf32>
    %103 = tpu.matmul %102, %100, %cst_93 {dimension_numbers = #tpu.dot_dimension_numbers<[1], [0], [0], [1], [0, 0, 1, 1], [], []>} : vector<8x4xf32>, vector<4x64xf32>, vector<8x64xf32> -> vector<8x64xf32>
    %104 = arith.addf %95, %103 : vector<8x64xf32>
    %cst_94 = arith.constant dense<0.000000e+00> : vector<8xf32>
    %105 = vector.multi_reduction <add>, %104, %cst_94 [1] : vector<8x64xf32> to vector<8xf32>
    %106 = vector.shape_cast %105 : vector<8xf32> to vector<8x1xf32>
    %cst_95 = arith.constant 1.562500e-02 : f32
    %107 = vector.broadcast %cst_95 : f32 to vector<8x1xf32>
    %108 = arith.mulf %106, %107 : vector<8x1xf32>
    %109 = arith.mulf %104, %104 : vector<8x64xf32>
    %cst_96 = arith.constant dense<0.000000e+00> : vector<8xf32>
    %110 = vector.multi_reduction <add>, %109, %cst_96 [1] : vector<8x64xf32> to vector<8xf32>
    %111 = vector.shape_cast %110 : vector<8xf32> to vector<8x1xf32>
    %cst_97 = arith.constant 1.562500e-02 : f32
    %112 = vector.broadcast %cst_97 : f32 to vector<8x1xf32>
    %113 = arith.mulf %111, %112 : vector<8x1xf32>
    %114 = arith.mulf %108, %108 : vector<8x1xf32>
    %115 = arith.subf %113, %114 : vector<8x1xf32>
    %116 = vector.broadcast %108 : vector<8x1xf32> to vector<8x64xf32>
    %117 = arith.subf %104, %116 : vector<8x64xf32>
    %cst_98 = arith.constant 0.000000e+00 : f32
    %118 = vector.broadcast %cst_98 : f32 to vector<8x1xf32>
    %119 = arith.maximumf %115, %118 : vector<8x1xf32>
    %cst_99 = arith.constant 9.99999974E-6 : f32
    %120 = vector.broadcast %cst_99 : f32 to vector<8x1xf32>
    %121 = arith.addf %119, %120 : vector<8x1xf32>
    %122 = math.rsqrt %121 : vector<8x1xf32>
    %123 = vector.broadcast %122 : vector<8x1xf32> to vector<8x64xf32>
    %124 = arith.mulf %117, %123 : vector<8x64xf32>
    %cst_100 = arith.constant 0.000000e+00 : f32
    %125 = vector.broadcast %cst_100 : f32 to vector<8x64xf32>
    %126 = arith.cmpf oge, %124, %125 : vector<8x64xf32>
    %cst_101 = arith.constant 0.00999999977 : f32
    %127 = vector.broadcast %cst_101 : f32 to vector<8x64xf32>
    %128 = arith.mulf %127, %124 : vector<8x64xf32>
    %129 = arith.select %126, %124, %128 : vector<8x64xi1>, vector<8x64xf32>
    %c0_102 = arith.constant 0 : index
    %c9_103 = arith.constant 9 : index
    %130 = vector.load %arg10[%c0_102, %c9_103] : memref<8x82xf32, #tpu.memory_space<vmem>>, vector<8x64xf32>
    tpu.vector_store %arg10[%c0_102, %c9_103], %129 {strides = array<i32>} : memref<8x82xf32, #tpu.memory_space<vmem>>, vector<8x64xf32>,
    %cst_104 = arith.constant 0.000000e+00 : f32
    %131 = vector.broadcast %cst_104 : f32 to vector<8x64xf32>
    %c0_105 = arith.constant 0 : index
    %c0_106 = arith.constant 0 : index
    %132 = vector.load %arg10[%c0_105, %c0_106] : memref<8x82xf32, #tpu.memory_space<vmem>>, vector<8x64xf32>
    %c0_107 = arith.constant 0 : index
    %c0_108 = arith.constant 0 : index
    %c0_109 = arith.constant 0 : index
    %133 = vector.load %arg4[%c0_107, %c0_108, %c0_109] : memref<9x1x64xf32, #tpu.memory_space<vmem>>, vector<1x1x64xf32>
    %134 = vector.shape_cast %133 : vector<1x1x64xf32> to vector<1x64xf32>
    %135 = vector.broadcast %134 : vector<1x64xf32> to vector<8x64xf32>
    %136 = arith.mulf %132, %135 : vector<8x64xf32>
    %c0_110 = arith.constant 0 : index
    %c0_111 = arith.constant 0 : index
    %c0_112 = arith.constant 0 : index
    %137 = vector.load %arg6[%c0_110, %c0_111, %c0_112] : memref<9x8x8xf32, #tpu.memory_space<vmem>>, vector<1x8x8xf32>
    %138 = vector.shape_cast %137 : vector<1x8x8xf32> to vector<8x8xf32>
    %cst_113 = arith.constant dense<0.000000e+00> : vector<8x64xf32>
    %139 = tpu.matmul %138, %136, %cst_113 {dimension_numbers = #tpu.dot_dimension_numbers<[1], [0], [0], [1], [0, 0, 1, 1], [], []>} : vector<8x8xf32>, vector<8x64xf32>, vector<8x64xf32> -> vector<8x64xf32>
    %140 = arith.addf %131, %139 : vector<8x64xf32>
    %c0_114 = arith.constant 0 : index
    %c1_115 = arith.constant 1 : index
    %141 = vector.load %arg10[%c0_114, %c1_115] : memref<8x82xf32, #tpu.memory_space<vmem>>, vector<8x64xf32>
    %c1_116 = arith.constant 1 : index
    %c0_117 = arith.constant 0 : index
    %c0_118 = arith.constant 0 : index
    %142 = vector.load %arg4[%c1_116, %c0_117, %c0_118] : memref<9x1x64xf32, #tpu.memory_space<vmem>>, vector<1x1x64xf32>
    %143 = vector.shape_cast %142 : vector<1x1x64xf32> to vector<1x64xf32>
    %144 = vector.broadcast %143 : vector<1x64xf32> to vector<8x64xf32>
    %145 = arith.mulf %141, %144 : vector<8x64xf32>
    %c1_119 = arith.constant 1 : index
    %c0_120 = arith.constant 0 : index
    %c0_121 = arith.constant 0 : index
    %146 = vector.load %arg6[%c1_119, %c0_120, %c0_121] : memref<9x8x8xf32, #tpu.memory_space<vmem>>, vector<1x8x8xf32>
    %147 = vector.shape_cast %146 : vector<1x8x8xf32> to vector<8x8xf32>
    %cst_122 = arith.constant dense<0.000000e+00> : vector<8x64xf32>
    %148 = tpu.matmul %147, %145, %cst_122 {dimension_numbers = #tpu.dot_dimension_numbers<[1], [0], [0], [1], [0, 0, 1, 1], [], []>} : vector<8x8xf32>, vector<8x64xf32>, vector<8x64xf32> -> vector<8x64xf32>
    %149 = arith.addf %140, %148 : vector<8x64xf32>
    %c0_123 = arith.constant 0 : index
    %c2_124 = arith.constant 2 : index
    %150 = vector.load %arg10[%c0_123, %c2_124] : memref<8x82xf32, #tpu.memory_space<vmem>>, vector<8x64xf32>
    %c2_125 = arith.constant 2 : index
    %c0_126 = arith.constant 0 : index
    %c0_127 = arith.constant 0 : index
    %151 = vector.load %arg4[%c2_125, %c0_126, %c0_127] : memref<9x1x64xf32, #tpu.memory_space<vmem>>, vector<1x1x64xf32>
    %152 = vector.shape_cast %151 : vector<1x1x64xf32> to vector<1x64xf32>
    %153 = vector.broadcast %152 : vector<1x64xf32> to vector<8x64xf32>
    %154 = arith.mulf %150, %153 : vector<8x64xf32>
    %c2_128 = arith.constant 2 : index
    %c0_129 = arith.constant 0 : index
    %c0_130 = arith.constant 0 : index
    %155 = vector.load %arg6[%c2_128, %c0_129, %c0_130] : memref<9x8x8xf32, #tpu.memory_space<vmem>>, vector<1x8x8xf32>
    %156 = vector.shape_cast %155 : vector<1x8x8xf32> to vector<8x8xf32>
    %cst_131 = arith.constant dense<0.000000e+00> : vector<8x64xf32>
    %157 = tpu.matmul %156, %154, %cst_131 {dimension_numbers = #tpu.dot_dimension_numbers<[1], [0], [0], [1], [0, 0, 1, 1], [], []>} : vector<8x8xf32>, vector<8x64xf32>, vector<8x64xf32> -> vector<8x64xf32>
    %158 = arith.addf %149, %157 : vector<8x64xf32>
    %c0_132 = arith.constant 0 : index
    %c8_133 = arith.constant 8 : index
    %159 = vector.load %arg10[%c0_132, %c8_133] : memref<8x82xf32, #tpu.memory_space<vmem>>, vector<8x64xf32>
    %c3_134 = arith.constant 3 : index
    %c0_135 = arith.constant 0 : index
    %c0_136 = arith.constant 0 : index
    %160 = vector.load %arg4[%c3_134, %c0_135, %c0_136] : memref<9x1x64xf32, #tpu.memory_space<vmem>>, vector<1x1x64xf32>
    %161 = vector.shape_cast %160 : vector<1x1x64xf32> to vector<1x64xf32>
    %162 = vector.broadcast %161 : vector<1x64xf32> to vector<8x64xf32>
    %163 = arith.mulf %159, %162 : vector<8x64xf32>
    %c3_137 = arith.constant 3 : index
    %c0_138 = arith.constant 0 : index
    %c0_139 = arith.constant 0 : index
    %164 = vector.load %arg6[%c3_137, %c0_138, %c0_139] : memref<9x8x8xf32, #tpu.memory_space<vmem>>, vector<1x8x8xf32>
    %165 = vector.shape_cast %164 : vector<1x8x8xf32> to vector<8x8xf32>
    %cst_140 = arith.constant dense<0.000000e+00> : vector<8x64xf32>
    %166 = tpu.matmul %165, %163, %cst_140 {dimension_numbers = #tpu.dot_dimension_numbers<[1], [0], [0], [1], [0, 0, 1, 1], [], []>} : vector<8x8xf32>, vector<8x64xf32>, vector<8x64xf32> -> vector<8x64xf32>
    %167 = arith.addf %158, %166 : vector<8x64xf32>
    %c0_141 = arith.constant 0 : index
    %c9_142 = arith.constant 9 : index
    %168 = vector.load %arg10[%c0_141, %c9_142] : memref<8x82xf32, #tpu.memory_space<vmem>>, vector<8x64xf32>
    %c4_143 = arith.constant 4 : index
    %c0_144 = arith.constant 0 : index
    %c0_145 = arith.constant 0 : index
    %169 = vector.load %arg4[%c4_143, %c0_144, %c0_145] : memref<9x1x64xf32, #tpu.memory_space<vmem>>, vector<1x1x64xf32>
    %170 = vector.shape_cast %169 : vector<1x1x64xf32> to vector<1x64xf32>
    %171 = vector.broadcast %170 : vector<1x64xf32> to vector<8x64xf32>
    %172 = arith.mulf %168, %171 : vector<8x64xf32>
    %c4_146 = arith.constant 4 : index
    %c0_147 = arith.constant 0 : index
    %c0_148 = arith.constant 0 : index
    %173 = vector.load %arg6[%c4_146, %c0_147, %c0_148] : memref<9x8x8xf32, #tpu.memory_space<vmem>>, vector<1x8x8xf32>
    %174 = vector.shape_cast %173 : vector<1x8x8xf32> to vector<8x8xf32>
    %cst_149 = arith.constant dense<0.000000e+00> : vector<8x64xf32>
    %175 = tpu.matmul %174, %172, %cst_149 {dimension_numbers = #tpu.dot_dimension_numbers<[1], [0], [0], [1], [0, 0, 1, 1], [], []>} : vector<8x8xf32>, vector<8x64xf32>, vector<8x64xf32> -> vector<8x64xf32>
    %176 = arith.addf %167, %175 : vector<8x64xf32>
    %c0_150 = arith.constant 0 : index
    %c10_151 = arith.constant 10 : index
    %177 = vector.load %arg10[%c0_150, %c10_151] : memref<8x82xf32, #tpu.memory_space<vmem>>, vector<8x64xf32>
    %c5_152 = arith.constant 5 : index
    %c0_153 = arith.constant 0 : index
    %c0_154 = arith.constant 0 : index
    %178 = vector.load %arg4[%c5_152, %c0_153, %c0_154] : memref<9x1x64xf32, #tpu.memory_space<vmem>>, vector<1x1x64xf32>
    %179 = vector.shape_cast %178 : vector<1x1x64xf32> to vector<1x64xf32>
    %180 = vector.broadcast %179 : vector<1x64xf32> to vector<8x64xf32>
    %181 = arith.mulf %177, %180 : vector<8x64xf32>
    %c5_155 = arith.constant 5 : index
    %c0_156 = arith.constant 0 : index
    %c0_157 = arith.constant 0 : index
    %182 = vector.load %arg6[%c5_155, %c0_156, %c0_157] : memref<9x8x8xf32, #tpu.memory_space<vmem>>, vector<1x8x8xf32>
    %183 = vector.shape_cast %182 : vector<1x8x8xf32> to vector<8x8xf32>
    %cst_158 = arith.constant dense<0.000000e+00> : vector<8x64xf32>
    %184 = tpu.matmul %183, %181, %cst_158 {dimension_numbers = #tpu.dot_dimension_numbers<[1], [0], [0], [1], [0, 0, 1, 1], [], []>} : vector<8x8xf32>, vector<8x64xf32>, vector<8x64xf32> -> vector<8x64xf32>
    %185 = arith.addf %176, %184 : vector<8x64xf32>
    %c0_159 = arith.constant 0 : index
    %c16_160 = arith.constant 16 : index
    %186 = vector.load %arg10[%c0_159, %c16_160] : memref<8x82xf32, #tpu.memory_space<vmem>>, vector<8x64xf32>
    %c6_161 = arith.constant 6 : index
    %c0_162 = arith.constant 0 : index
    %c0_163 = arith.constant 0 : index
    %187 = vector.load %arg4[%c6_161, %c0_162, %c0_163] : memref<9x1x64xf32, #tpu.memory_space<vmem>>, vector<1x1x64xf32>
    %188 = vector.shape_cast %187 : vector<1x1x64xf32> to vector<1x64xf32>
    %189 = vector.broadcast %188 : vector<1x64xf32> to vector<8x64xf32>
    %190 = arith.mulf %186, %189 : vector<8x64xf32>
    %c6_164 = arith.constant 6 : index
    %c0_165 = arith.constant 0 : index
    %c0_166 = arith.constant 0 : index
    %191 = vector.load %arg6[%c6_164, %c0_165, %c0_166] : memref<9x8x8xf32, #tpu.memory_space<vmem>>, vector<1x8x8xf32>
    %192 = vector.shape_cast %191 : vector<1x8x8xf32> to vector<8x8xf32>
    %cst_167 = arith.constant dense<0.000000e+00> : vector<8x64xf32>
    %193 = tpu.matmul %192, %190, %cst_167 {dimension_numbers = #tpu.dot_dimension_numbers<[1], [0], [0], [1], [0, 0, 1, 1], [], []>} : vector<8x8xf32>, vector<8x64xf32>, vector<8x64xf32> -> vector<8x64xf32>
    %194 = arith.addf %185, %193 : vector<8x64xf32>
    %c0_168 = arith.constant 0 : index
    %c17_169 = arith.constant 17 : index
    %195 = vector.load %arg10[%c0_168, %c17_169] : memref<8x82xf32, #tpu.memory_space<vmem>>, vector<8x64xf32>
    %c7_170 = arith.constant 7 : index
    %c0_171 = arith.constant 0 : index
    %c0_172 = arith.constant 0 : index
    %196 = vector.load %arg4[%c7_170, %c0_171, %c0_172] : memref<9x1x64xf32, #tpu.memory_space<vmem>>, vector<1x1x64xf32>
    %197 = vector.shape_cast %196 : vector<1x1x64xf32> to vector<1x64xf32>
    %198 = vector.broadcast %197 : vector<1x64xf32> to vector<8x64xf32>
    %199 = arith.mulf %195, %198 : vector<8x64xf32>
    %c7_173 = arith.constant 7 : index
    %c0_174 = arith.constant 0 : index
    %c0_175 = arith.constant 0 : index
    %200 = vector.load %arg6[%c7_173, %c0_174, %c0_175] : memref<9x8x8xf32, #tpu.memory_space<vmem>>, vector<1x8x8xf32>
    %201 = vector.shape_cast %200 : vector<1x8x8xf32> to vector<8x8xf32>
    %cst_176 = arith.constant dense<0.000000e+00> : vector<8x64xf32>
    %202 = tpu.matmul %201, %199, %cst_176 {dimension_numbers = #tpu.dot_dimension_numbers<[1], [0], [0], [1], [0, 0, 1, 1], [], []>} : vector<8x8xf32>, vector<8x64xf32>, vector<8x64xf32> -> vector<8x64xf32>
    %203 = arith.addf %194, %202 : vector<8x64xf32>
    %c0_177 = arith.constant 0 : index
    %c18_178 = arith.constant 18 : index
    %204 = vector.load %arg10[%c0_177, %c18_178] : memref<8x82xf32, #tpu.memory_space<vmem>>, vector<8x64xf32>
    %c8_179 = arith.constant 8 : index
    %c0_180 = arith.constant 0 : index
    %c0_181 = arith.constant 0 : index
    %205 = vector.load %arg4[%c8_179, %c0_180, %c0_181] : memref<9x1x64xf32, #tpu.memory_space<vmem>>, vector<1x1x64xf32>
    %206 = vector.shape_cast %205 : vector<1x1x64xf32> to vector<1x64xf32>
    %207 = vector.broadcast %206 : vector<1x64xf32> to vector<8x64xf32>
    %208 = arith.mulf %204, %207 : vector<8x64xf32>
    %c8_182 = arith.constant 8 : index
    %c0_183 = arith.constant 0 : index
    %c0_184 = arith.constant 0 : index
    %209 = vector.load %arg6[%c8_182, %c0_183, %c0_184] : memref<9x8x8xf32, #tpu.memory_space<vmem>>, vector<1x8x8xf32>
    %210 = vector.shape_cast %209 : vector<1x8x8xf32> to vector<8x8xf32>
    %cst_185 = arith.constant dense<0.000000e+00> : vector<8x64xf32>
    %211 = tpu.matmul %210, %208, %cst_185 {dimension_numbers = #tpu.dot_dimension_numbers<[1], [0], [0], [1], [0, 0, 1, 1], [], []>} : vector<8x8xf32>, vector<8x64xf32>, vector<8x64xf32> -> vector<8x64xf32>
    %212 = arith.addf %203, %211 : vector<8x64xf32>
    %cst_186 = arith.constant dense<0.000000e+00> : vector<8xf32>
    %213 = vector.multi_reduction <add>, %212, %cst_186 [1] : vector<8x64xf32> to vector<8xf32>
    %214 = vector.shape_cast %213 : vector<8xf32> to vector<8x1xf32>
    %cst_187 = arith.constant 1.562500e-02 : f32
    %215 = vector.broadcast %cst_187 : f32 to vector<8x1xf32>
    %216 = arith.mulf %214, %215 : vector<8x1xf32>
    %217 = arith.mulf %212, %212 : vector<8x64xf32>
    %cst_188 = arith.constant dense<0.000000e+00> : vector<8xf32>
    %218 = vector.multi_reduction <add>, %217, %cst_188 [1] : vector<8x64xf32> to vector<8xf32>
    %219 = vector.shape_cast %218 : vector<8xf32> to vector<8x1xf32>
    %cst_189 = arith.constant 1.562500e-02 : f32
    %220 = vector.broadcast %cst_189 : f32 to vector<8x1xf32>
    %221 = arith.mulf %219, %220 : vector<8x1xf32>
    %222 = arith.mulf %216, %216 : vector<8x1xf32>
    %223 = arith.subf %221, %222 : vector<8x1xf32>
    %224 = vector.broadcast %216 : vector<8x1xf32> to vector<8x64xf32>
    %225 = arith.subf %212, %224 : vector<8x64xf32>
    %cst_190 = arith.constant 0.000000e+00 : f32
    %226 = vector.broadcast %cst_190 : f32 to vector<8x1xf32>
    %227 = arith.maximumf %223, %226 : vector<8x1xf32>
    %cst_191 = arith.constant 9.99999974E-6 : f32
    %228 = vector.broadcast %cst_191 : f32 to vector<8x1xf32>
    %229 = arith.addf %227, %228 : vector<8x1xf32>
    %230 = math.rsqrt %229 : vector<8x1xf32>
    %231 = vector.broadcast %230 : vector<8x1xf32> to vector<8x64xf32>
    %232 = arith.mulf %225, %231 : vector<8x64xf32>
    %cst_192 = arith.constant 0.000000e+00 : f32
    %233 = vector.broadcast %cst_192 : f32 to vector<8x64xf32>
    %234 = arith.cmpf oge, %232, %233 : vector<8x64xf32>
    %cst_193 = arith.constant 0.00999999977 : f32
    %235 = vector.broadcast %cst_193 : f32 to vector<8x64xf32>
    %236 = arith.mulf %235, %232 : vector<8x64xf32>
    %237 = arith.select %234, %232, %236 : vector<8x64xi1>, vector<8x64xf32>
    %cst_194 = arith.constant 0.000000e+00 : f32
    %238 = vector.broadcast %cst_194 : f32 to vector<4x256xf32>
    %c0_195 = arith.constant 0 : index
    %c0_196 = arith.constant 0 : index
    %c0_197 = arith.constant 0 : index
    %239 = vector.load %arg7[%c0_195, %c0_196, %c0_197] : memref<4x4x8xf32, #tpu.memory_space<vmem>>, vector<1x4x8xf32>
    %240 = vector.shape_cast %239 : vector<1x4x8xf32> to vector<4x8xf32>
    %cst_198 = arith.constant dense<0.000000e+00> : vector<4x64xf32>
    %241 = tpu.matmul %240, %237, %cst_198 {dimension_numbers = #tpu.dot_dimension_numbers<[1], [0], [0], [1], [0, 0, 1, 1], [], []>} : vector<4x8xf32>, vector<8x64xf32>, vector<4x64xf32> -> vector<4x64xf32>
    %c0_199 = arith.constant 0 : index
    %c0_200 = arith.constant 0 : index
    %c0_201 = arith.constant 0 : index
    %242 = vector.load %arg3[%c0_199, %c0_200, %c0_201] : memref<4x64x256xf32, #tpu.memory_space<vmem>>, vector<1x64x256xf32>
    %243 = vector.shape_cast %242 : vector<1x64x256xf32> to vector<64x256xf32>
    %cst_202 = arith.constant dense<0.000000e+00> : vector<4x256xf32>
    %244 = tpu.matmul %241, %243, %cst_202 {dimension_numbers = #tpu.dot_dimension_numbers<[1], [0], [0], [1], [0, 0, 1, 1], [], []>} : vector<4x64xf32>, vector<64x256xf32>, vector<4x256xf32> -> vector<4x256xf32>
    %245 = arith.addf %238, %244 : vector<4x256xf32>
    %c1_203 = arith.constant 1 : index
    %c0_204 = arith.constant 0 : index
    %c0_205 = arith.constant 0 : index
    %246 = vector.load %arg7[%c1_203, %c0_204, %c0_205] : memref<4x4x8xf32, #tpu.memory_space<vmem>>, vector<1x4x8xf32>
    %247 = vector.shape_cast %246 : vector<1x4x8xf32> to vector<4x8xf32>
    %cst_206 = arith.constant dense<0.000000e+00> : vector<4x64xf32>
    %248 = tpu.matmul %247, %237, %cst_206 {dimension_numbers = #tpu.dot_dimension_numbers<[1], [0], [0], [1], [0, 0, 1, 1], [], []>} : vector<4x8xf32>, vector<8x64xf32>, vector<4x64xf32> -> vector<4x64xf32>
    %c1_207 = arith.constant 1 : index
    %c0_208 = arith.constant 0 : index
    %c0_209 = arith.constant 0 : index
    %249 = vector.load %arg3[%c1_207, %c0_208, %c0_209] : memref<4x64x256xf32, #tpu.memory_space<vmem>>, vector<1x64x256xf32>
    %250 = vector.shape_cast %249 : vector<1x64x256xf32> to vector<64x256xf32>
    %cst_210 = arith.constant dense<0.000000e+00> : vector<4x256xf32>
    %251 = tpu.matmul %248, %250, %cst_210 {dimension_numbers = #tpu.dot_dimension_numbers<[1], [0], [0], [1], [0, 0, 1, 1], [], []>} : vector<4x64xf32>, vector<64x256xf32>, vector<4x256xf32> -> vector<4x256xf32>
    %252 = arith.addf %245, %251 : vector<4x256xf32>
    %c2_211 = arith.constant 2 : index
    %c0_212 = arith.constant 0 : index
    %c0_213 = arith.constant 0 : index
    %253 = vector.load %arg7[%c2_211, %c0_212, %c0_213] : memref<4x4x8xf32, #tpu.memory_space<vmem>>, vector<1x4x8xf32>
    %254 = vector.shape_cast %253 : vector<1x4x8xf32> to vector<4x8xf32>
    %cst_214 = arith.constant dense<0.000000e+00> : vector<4x64xf32>
    %255 = tpu.matmul %254, %237, %cst_214 {dimension_numbers = #tpu.dot_dimension_numbers<[1], [0], [0], [1], [0, 0, 1, 1], [], []>} : vector<4x8xf32>, vector<8x64xf32>, vector<4x64xf32> -> vector<4x64xf32>
    %c2_215 = arith.constant 2 : index
    %c0_216 = arith.constant 0 : index
    %c0_217 = arith.constant 0 : index
    %256 = vector.load %arg3[%c2_215, %c0_216, %c0_217] : memref<4x64x256xf32, #tpu.memory_space<vmem>>, vector<1x64x256xf32>
    %257 = vector.shape_cast %256 : vector<1x64x256xf32> to vector<64x256xf32>
    %cst_218 = arith.constant dense<0.000000e+00> : vector<4x256xf32>
    %258 = tpu.matmul %255, %257, %cst_218 {dimension_numbers = #tpu.dot_dimension_numbers<[1], [0], [0], [1], [0, 0, 1, 1], [], []>} : vector<4x64xf32>, vector<64x256xf32>, vector<4x256xf32> -> vector<4x256xf32>
    %259 = arith.addf %252, %258 : vector<4x256xf32>
    %c3_219 = arith.constant 3 : index
    %c0_220 = arith.constant 0 : index
    %c0_221 = arith.constant 0 : index
    %260 = vector.load %arg7[%c3_219, %c0_220, %c0_221] : memref<4x4x8xf32, #tpu.memory_space<vmem>>, vector<1x4x8xf32>
    %261 = vector.shape_cast %260 : vector<1x4x8xf32> to vector<4x8xf32>
    %cst_222 = arith.constant dense<0.000000e+00> : vector<4x64xf32>
    %262 = tpu.matmul %261, %237, %cst_222 {dimension_numbers = #tpu.dot_dimension_numbers<[1], [0], [0], [1], [0, 0, 1, 1], [], []>} : vector<4x8xf32>, vector<8x64xf32>, vector<4x64xf32> -> vector<4x64xf32>
    %c3_223 = arith.constant 3 : index
    %c0_224 = arith.constant 0 : index
    %c0_225 = arith.constant 0 : index
    %263 = vector.load %arg3[%c3_223, %c0_224, %c0_225] : memref<4x64x256xf32, #tpu.memory_space<vmem>>, vector<1x64x256xf32>
    %264 = vector.shape_cast %263 : vector<1x64x256xf32> to vector<64x256xf32>
    %cst_226 = arith.constant dense<0.000000e+00> : vector<4x256xf32>
    %265 = tpu.matmul %262, %264, %cst_226 {dimension_numbers = #tpu.dot_dimension_numbers<[1], [0], [0], [1], [0, 0, 1, 1], [], []>} : vector<4x64xf32>, vector<64x256xf32>, vector<4x256xf32> -> vector<4x256xf32>
    %266 = arith.addf %259, %265 : vector<4x256xf32>
    %c0_227 = arith.constant 0 : index
    %c0_228 = arith.constant 0 : index
    %267 = vector.load %arg8[%c0_227, %c0_228] : memref<4x1xf32, #tpu.memory_space<vmem>>, vector<4x1xf32>
    %268 = vector.broadcast %267 : vector<4x1xf32> to vector<4x256xf32>
    %269 = arith.addf %266, %268 : vector<4x256xf32>
    %c0_229 = arith.constant 0 : index
    %c4_230 = arith.constant 4 : index
    %c0_231 = arith.constant 0 : index
    %270 = vector.load %arg9[%c0_229, %c4_230, %c0_231] : memref<1x8x256xf32, #tpu.memory_space<vmem>>, vector<1x4x256xf32>
    %271 = vector.shape_cast %270 : vector<1x4x256xf32> to vector<4x256xf32>
    %272 = vector.shape_cast %269 : vector<4x256xf32> to vector<1x4x256xf32>
    tpu.vector_store %arg9[%c0_229, %c4_230, %c0_231], %272 {strides = array<i32>} : memref<1x8x256xf32, #tpu.memory_space<vmem>>, vector<1x4x256xf32>,
    return
  }
  func.func @transform_0(%arg0: i32) -> (i32, i32, i32) {
    %c0_i32 = arith.constant 0 : i32
    %c0_i32_0 = arith.constant 0 : i32
    %c0_i32_1 = arith.constant 0 : i32
    return %arg0, %c0_i32, %c0_i32_0 : i32, i32, i32
  }
  func.func @transform_1(%arg0: i32) -> (i32, i32, i32) {
    %c0_i32 = arith.constant 0 : i32
    %c0_i32_0 = arith.constant 0 : i32
    %c0_i32_1 = arith.constant 0 : i32
    %c0_i32_2 = arith.constant 0 : i32
    return %c0_i32, %c0_i32_0, %c0_i32_1 : i32, i32, i32
  }
  func.func @transform_2(%arg0: i32) -> (i32, i32, i32) {
    %c0_i32 = arith.constant 0 : i32
    %c0_i32_0 = arith.constant 0 : i32
    %c0_i32_1 = arith.constant 0 : i32
    %c0_i32_2 = arith.constant 0 : i32
    return %c0_i32, %c0_i32_0, %c0_i32_1 : i32, i32, i32
  }
  func.func @transform_3(%arg0: i32) -> (i32, i32, i32) {
    %c0_i32 = arith.constant 0 : i32
    %c0_i32_0 = arith.constant 0 : i32
    %c0_i32_1 = arith.constant 0 : i32
    %c0_i32_2 = arith.constant 0 : i32
    return %c0_i32, %c0_i32_0, %c0_i32_1 : i32, i32, i32
  }
  func.func @transform_4(%arg0: i32) -> (i32, i32, i32) {
    %c0_i32 = arith.constant 0 : i32
    %c0_i32_0 = arith.constant 0 : i32
    %c0_i32_1 = arith.constant 0 : i32
    %c0_i32_2 = arith.constant 0 : i32
    return %c0_i32, %c0_i32_0, %c0_i32_1 : i32, i32, i32
  }
  func.func @transform_5(%arg0: i32) -> (i32, i32, i32) {
    %c0_i32 = arith.constant 0 : i32
    %c0_i32_0 = arith.constant 0 : i32
    %c0_i32_1 = arith.constant 0 : i32
    %c0_i32_2 = arith.constant 0 : i32
    return %c0_i32, %c0_i32_0, %c0_i32_1 : i32, i32, i32
  }
  func.func @transform_6(%arg0: i32) -> (i32, i32, i32) {
    %c0_i32 = arith.constant 0 : i32
    %c0_i32_0 = arith.constant 0 : i32
    %c0_i32_1 = arith.constant 0 : i32
    %c0_i32_2 = arith.constant 0 : i32
    return %c0_i32, %c0_i32_0, %c0_i32_1 : i32, i32, i32
  }
  func.func @transform_7(%arg0: i32) -> (i32, i32) {
    %c0_i32 = arith.constant 0 : i32
    %c0_i32_0 = arith.constant 0 : i32
    %c0_i32_1 = arith.constant 0 : i32
    return %c0_i32, %c0_i32_0 : i32, i32
  }
  func.func @transform_8(%arg0: i32) -> (i32, i32, i32) {
    %c0_i32 = arith.constant 0 : i32
    %c0_i32_0 = arith.constant 0 : i32
    %c0_i32_1 = arith.constant 0 : i32
    return %arg0, %c0_i32, %c0_i32_0 : i32, i32, i32
  }
}

</mosaic_0001>

<bundles_post_ra>
// kernel: unet_innermost_forward.1
= control target key start
LH: loop header
LB: loop body
LE: loop exit
PB: predicated region body
PF: predicated region fallthrough
CT: control target
= control target key end

     0   :  { %13 = vsyncpa [#allocation4], 0  ;;  %s4155_s0 = inlined_call_operand.vmem [shape: f32[2,4,256], index: 0, kind: input, shape index: {}]   ;;  %s4156_s1 = inlined_call_operand.hbm [shape: f32[4,256,64], index: 1, kind: input, shape index: {}]   ;;  %s4157_s2 = inlined_call_operand.hbm [shape: f32[4,64,256], index: 2, kind: input, shape index: {}]   ;;  %s4158_s3 = inlined_call_operand.vmem [shape: f32[9,1,64], index: 3, kind: input, shape index: {}]   ;;  %s4159_s4 = inlined_call_operand.vmem [shape: f32[9,8,4], index: 4, kind: input, shape index: {}]   ;;  %s4160_s5 = inlined_call_operand.vmem [shape: f32[9,8,8], index: 5, kind: input, shape index: {}]   ;;  %s4161_s6 = inlined_call_operand.vmem [shape: f32[4,4,8], index: 6, kind: input, shape index: {}]   ;;  %s4162_s7 = inlined_call_operand.vmem [shape: f32[4,1], index: 7, kind: input, shape index: {}]   ;;  %s4163_s8 = inlined_call_operand.vmem [shape: f32[2,8,256], index: 8, kind: output, shape index: {}]  }
   0x1   :  { %14 = vsyncpa [#allocation6], 0  ;;  %s3789_s27 = smov 0  }
   0x2 LB: > { %s3719_s28 = smov [#allocation3]   ;;  %s3795_s30 = sadd.s32 4294967295, %s3717_s27   ;;  %s3717_s27 = sphi %s3789_s27, %s20_s27  }
   0x3   : > { %s236_s29 = sshll.u32 %s3719_s28, 4  ;;  %p3196_p0 = scmp.ge.s32.totalorder %s3717_s27, 1  ;;  %s237_s29 = int_to_ptr.vmem [resolvable:$true] %s236_s29 }
   0x4   : > { %p224_p1 = scmp.lt.s32.totalorder %s3717_s27, 3  ;;  %p3608_p3 = scmp.eq.s32.totalorder %s3795_s30, 0 }
   0x5   : > { %s3720_s10 = smov [#allocation5]   ;;  %s3662_s13 = scalar_lea.vmem %s237_s29, 16384 }
   0x6   : > { %p3799_p2 = pnand %p3196_p0, %p224_p1  ;;  %s249_s11 = sshll.u32 %s3720_s10, 4  ;;  %s250_s11 = int_to_ptr.vmem [resolvable:$true] %s249_s11 }
   0x7   : > { %p3663_p7 = scmp.ne.s32.totalorder %s237_s29, %s3662_s13  ;;  %p3670_p10 = scmp.lt.s32.totalorder %s237_s29, %s237_s29 }
   0x8   : > { %p3601_p4 = pneg %p3799_p2  ;;  %p3671_p11 = scmp.lt.s32.totalorder %s3662_s13, %s3662_s13 }
   0xa   : > { %p3808_p5 = pnand %p3608_p3, %p3601_p4  ;;  %p3672_p12 = por %p3671_p11, %p3670_p10 }
   0xc   : > { %p3653_p6 = pneg %p3808_p5 }
   0xe   : > { %p3665_p8 = pnand %p3663_p7, %p3653_p6 }
  0x10   : > { %p3666_p9 = pneg %p3665_p8 }
  0x12   : > { %p3673_p13 = pnand %p3672_p12, %p3666_p9 }
  0x14   : > { %3676 = shalt.err (!%p3673_p13)
}
  0x15   : > { %s3721_s14 = smov 128   ;;  %s3722_s15 = smov 8  }
  0x16   : > { %3604 = dma.hbm_to_vmem [thread:$0]  (!%p3808_p5), %s4156_s1, 16384, %s237_s29, [#allocation4], %s3721_s14, %s3721_s14, %s3722_s15  }
  0x17   : > { %s3688_s18 = scalar_lea.vmem %s250_s11, 8192  ;;  %p3696_p7 = scmp.lt.s32.totalorder %s250_s11, %s250_s11 }
  0x18   : > { %p3689_p0 = scmp.ne.s32.totalorder %s250_s11, %s3688_s18  ;;  %p3697_p8 = scmp.lt.s32.totalorder %s3688_s18, %s3688_s18 }
  0x1a   : > { %p3691_p1 = pnand %p3689_p0, %p3653_p6  ;;  %p3698_p10 = por %p3697_p8, %p3696_p7 }
  0x1c   : > { %p3692_p4 = pneg %p3691_p1 }
  0x1e   : > { %p3699_p9 = pnand %p3698_p10, %p3692_p4 }
  0x20   : > { %3702 = shalt.err (!%p3699_p9)
}
  0x21   : > { %s3723_s19 = smov 256   ;;  %s3724_s20 = smov 16  }
  0x22   : > { %3607 = dma.hbm_to_vmem [thread:$0]  (!%p3808_p5), %s4157_s2, 8192, %s250_s11, [#allocation6], %s3723_s19, %s3723_s19, %s3724_s20  }
  0x23   : > { %288 = sbr.rel (%p3799_p2) target bundleno = 2152 (0x868), region = 52 }
  0x28   : > { %3708 = dma.done.wait (%p3608_p3), [#allocation4], 16384  }
  0x29   : > { %3710 = vsyncadd (%p3608_p3), [#allocation4], 4294950912 }
  0x2a   : > { %3712 = dma.done.wait (%p3608_p3), [#allocation6], 8192  }
  0x2b   : > { %3714 = vsyncadd (%p3608_p3), [#allocation6], 4294959104  ;;  %v375_v0 = vld [vmem:[#allocation3 + $0xf8] sm:$0xff]  ;;  %v374_v4 = vld [vmem:[#allocation3 + $0xf0] sm:$0xff]  ;;  %p326_p2 = scmp.lt.s32.totalorder %s3795_s30, 1  ;;  %s3725_s9 = smov 2  }
  0x2c   : > { %v478_v1 = vld [vmem:[#allocation3 + $0x1f8] sm:$0xff]  ;;  %3299 = vmatprep.subr.mxu0 %v375_v0  ;;  %v477_v5 = vld [vmem:[#allocation3 + $0x1f0] sm:$0xff]  ;;  %v373_v8 = vld [vmem:[#allocation3 + $0xe8] sm:$0xff]  ;;  %s3726_s12 = smov 8   ;;  %s3727_s15 = smov 10   ;;  %vm336_vm0 = vcmask 670720  }
  0x2d   : > { %v359_v2 = vld [vmem:[#allocation3 + $0x78] sm:$0xff]  ;;  %3334 = vmatprep.subr.mxu1 %v478_v1  ;;  %v358_v6 = vld [vmem:[#allocation3 + $0x70] sm:$0xff]  ;;  %v476_v9 = vld [vmem:[#allocation3 + $0x1e8] sm:$0xff]  ;;  %s4171_s30 = smov (!%p326_p2, %s3795_s30), 1  ;;  %s3728_s18 = smov 17   ;;  %vm762_vm1 = vcmask 592968  }
  0x2e   : > { %v462_v3 = vld [vmem:[#allocation3 + $0x178] sm:$0xff]  ;;  %3300 = vmatpush3.msra.mxu0 %v359_v2  ;;  %v461_v7 = vld [vmem:[#allocation3 + $0x170] sm:$0xff]  ;;  %v357_v10 = vld [vmem:[#allocation3 + $0x68] sm:$0xff]  ;;  %s3297_s23 = sshll.u32 %s4171_s30, 3  ;;  %s3730_s19 = smov 9   ;;  %vm3734_vm2 = vmmov 0  }
  0x2f   : > { %3335 = vmatpush3.msra.mxu1 %v462_v3  ;;  %3301 = vmatprep.subr.mxu0 %v374_v4  ;;  %v460_v11 = vld [vmem:[#allocation3 + $0x168] sm:$0xff]  ;;  %v372_v12 = vld [vmem:[#allocation3 + $0xe0] sm:$0xff]  ;;  %v371_v16 = vld [vmem:[#allocation3 + $0xd8] sm:$0xff]  ;;  %s330_s26 = scalar_lea.vmem %s4155_s0, %s3297_s23  ;;  %s3731_s22 = smov 1   ;;  %vm794_vm3 = vcmask 1043456   ;;  %vm790_vm4 = vcmask 31744  }
  0x30   : > { %3336 = vmatprep.subr.mxu1 %v477_v5  ;;  %3302 = vmatpush3.msra.mxu0 %v358_v6  ;;  %v475_v13 = vld [vmem:[#allocation3 + $0x1e0] sm:$0xff]  ;;  %v474_v17 = vld [vmem:[#allocation3 + $0x1d8] sm:$0xff]  ;;  %v370_v20 = vld [vmem:[#allocation3 + $0xd0] sm:$0xff]  ;;  %s3732_s28 = smov 16   ;;  %s3733_s11 = smov 18   ;;  %vm1587_vm5 = vcmask 523264  }
  0x31   : > { %3337 = vmatpush3.msra.mxu1 %v461_v7  ;;  %3303 = vmatprep.subr.mxu0 %v373_v8  ;;  %v356_v14 = vld [vmem:[#allocation3 + $0x60] sm:$0xff]  ;;  %v355_v18 = vld [vmem:[#allocation3 + $0x58] sm:$0xff]  ;;  %v473_v21 = vld [vmem:[#allocation3 + $0x1d0] sm:$0xff]  ;;  %s3735_s13 = smov 127   ;;  %s3736_s14 = smov 126   ;;  %vm1611_vm7 = vcmask 597064  }
  0x32   : > { %3338 = vmatprep.subr.mxu1 %v476_v9  ;;  %v459_v15 = vld [vmem:[#allocation3 + $0x160] sm:$0xff]  ;;  %3304 = vmatpush3.msra.mxu0 %v357_v10  ;;  %v458_v19 = vld [vmem:[#allocation3 + $0x158] sm:$0xff]  ;;  %v354_v22 = vld [vmem:[#allocation3 + $0x50] sm:$0xff]  ;;  %s3737_s16 = smov 120   ;;  %s3738_s17 = smov 119   ;;  %vm1639_vm8 = vcmask 64512  }
  0x33   : > { %3339 = vmatpush3.msra.mxu1 %v460_v11  ;;  %3305 = vmatprep.subr.mxu0 %v372_v12  ;;  %v457_v23 = vld [vmem:[#allocation3 + $0x150] sm:$0xff]  ;;  %v369_v24 = vld [vmem:[#allocation3 + $0xc8] sm:$0xff]  ;;  %v368_v28 = vld [vmem:[#allocation3 + $0xc0] sm:$0xff]  ;;  %s3739_s20 = smov 118   ;;  %s3740_s21 = smov 112  }
  0x34   : > { %3340 = vmatprep.subr.mxu1 %v475_v13  ;;  %3306 = vmatpush3.msra.mxu0 %v356_v14  ;;  %v472_v25 = vld [vmem:[#allocation3 + $0x1c8] sm:$0xff]  ;;  %v471_v29 = vld [vmem:[#allocation3 + $0x1c0] sm:$0xff]  ;;  %v367_v32 = vld [vmem:[#allocation3 + $0xb8] sm:$0xff]  ;;  %s4165_s23 = smov 111   ;;  %s4164_s24 = smov 110  }
  0x35   : > { %3341 = vmatpush3.msra.mxu1 %v459_v15  ;;  %3307 = vmatprep.subr.mxu0 %v371_v16  ;;  %v353_v26 = vld [vmem:[#allocation3 + $0x48] sm:$0xff]  ;;  %v352_v30 = vld [vmem:[#allocation3 + $0x40] sm:$0xff]  ;;  %v470_v33 = vld [vmem:[#allocation3 + $0x1b8] sm:$0xff] }
  0x36   : > { %3342 = vmatprep.subr.mxu1 %v474_v17  ;;  %3308 = vmatpush3.msra.mxu0 %v355_v18  ;;  %v456_v27 = vld [vmem:[#allocation3 + $0x148] sm:$0xff]  ;;  %v455_v31 = vld [vmem:[#allocation3 + $0x140] sm:$0xff]  ;;  %v351_v34 = vld [vmem:[#allocation3 + $0x38] sm:$0xff] }
  0x37   : > { %3343 = vmatpush3.msra.mxu1 %v458_v19  ;;  %3309 = vmatprep.subr.mxu0 %v370_v20  ;;  %v454_v35 = vld [vmem:[#allocation3 + $0x138] sm:$0xff]  ;;  %v366_v36 = vld [vmem:[#allocation3 + $0xb0] sm:$0xff]  ;;  %v365_v40 = vld [vmem:[#allocation3 + $0xa8] sm:$0xff] }
  0x38   : > { %3344 = vmatprep.subr.mxu1 %v473_v21  ;;  %3310 = vmatpush3.msra.mxu0 %v354_v22  ;;  %v469_v37 = vld [vmem:[#allocation3 + $0x1b0] sm:$0xff]  ;;  %v468_v41 = vld [vmem:[#allocation3 + $0x1a8] sm:$0xff]  ;;  %v364_v44 = vld [vmem:[#allocation3 + $0xa0] sm:$0xff] }
  0x39   : > { %3345 = vmatpush3.msra.mxu1 %v457_v23  ;;  %3311 = vmatprep.subr.mxu0 %v369_v24  ;;  %v350_v38 = vld [vmem:[#allocation3 + $0x30] sm:$0xff]  ;;  %v349_v42 = vld [vmem:[#allocation3 + $0x28] sm:$0xff]  ;;  %v467_v45 = vld [vmem:[#allocation3 + $0x1a0] sm:$0xff] }
  0x3a   : > { %3346 = vmatprep.subr.mxu1 %v472_v25  ;;  %3312 = vmatpush3.msra.mxu0 %v353_v26  ;;  %v453_v39 = vld [vmem:[#allocation3 + $0x130] sm:$0xff]  ;;  %v452_v43 = vld [vmem:[#allocation3 + $0x128] sm:$0xff]  ;;  %v348_v46 = vld [vmem:[#allocation3 + $0x20] sm:$0xff] }
  0x3b   : > { %3347 = vmatpush3.msra.mxu1 %v456_v27  ;;  %3313 = vmatprep.subr.mxu0 %v368_v28  ;;  %v451_v47 = vld [vmem:[#allocation3 + $0x120] sm:$0xff]  ;;  %v363_v48 = vld [vmem:[#allocation3 + $0x98] sm:$0xff]  ;;  %v362_v52 = vld [vmem:[#allocation3 + $0x90] sm:$0xff] }
  0x3c   : > { %3348 = vmatprep.subr.mxu1 %v471_v29  ;;  %3314 = vmatpush3.msra.mxu0 %v352_v30  ;;  %v466_v49 = vld [vmem:[#allocation3 + $0x198] sm:$0xff]  ;;  %v465_v53 = vld [vmem:[#allocation3 + $0x190] sm:$0xff]  ;;  %v361_v57 = vld [vmem:[#allocation3 + $0x88] sm:$0xff] }
  0x3d   : > { %3349 = vmatpush3.msra.mxu1 %v455_v31  ;;  %3315 = vmatprep.subr.mxu0 %v367_v32  ;;  %v347_v50 = vld [vmem:[#allocation3 + $0x18] sm:$0xff]  ;;  %v346_v54 = vld [vmem:[#allocation3 + $0x10] sm:$0xff]  ;;  %v464_v58 = vld [vmem:[#allocation3 + $0x188] sm:$0xff] }
  0x3e   : > { %3350 = vmatprep.subr.mxu1 %v470_v33  ;;  %3316 = vmatpush3.msra.mxu0 %v351_v34  ;;  %v450_v51 = vld [vmem:[#allocation3 + $0x118] sm:$0xff]  ;;  %v449_v55 = vld [vmem:[#allocation3 + $0x110] sm:$0xff]  ;;  %v345_v59 = vld [vmem:[#allocation3 + $0x8] sm:$0xff] }
  0x3f   : > { %3351 = vmatpush3.msra.mxu1 %v454_v35  ;;  %3317 = vmatprep.subr.mxu0 %v366_v36  ;;  %v3850_v56 = vld [vmem:[%s330_s26] sm:$0xff]  ;;  %v448_v60 = vld [vmem:[#allocation3 + $0x108] sm:$0xff]  ;;  %v360_v61 = vld [vmem:[#allocation3 + $0x80] sm:$0xff] }
  0x40   : > { %3352 = vmatprep.subr.mxu1 %v469_v37  ;;  %3318 = vmatpush3.msra.mxu0 %v350_v38  ;;  %v463_v62 = vld [vmem:[#allocation3 + $0x180] sm:$0xff]  ;;  %v3854_v63 = vcombine.high %v3850_v56, %v3850_v56  ;;  %v582_v2 = vld [vmem:[#allocation3 + $0x2f8] sm:$0xff]  ;;  %v581_v6 = vld [vmem:[#allocation3 + $0x2f0] sm:$0xff] }
  0x41   : > { %3353 = vmatpush3.msra.mxu1 %v453_v39  ;;  %3319 = vmatprep.subr.mxu0 %v365_v40  ;;  %v344_v0 = vld [vmem:[#allocation3] sm:$0xff]  ;;  %v686_v3 = vld [vmem:[#allocation3 + $0x3f8] sm:$0xff]  ;;  %v685_v7 = vld [vmem:[#allocation3 + $0x3f0] sm:$0xff] }
  0x42   : > { %3354 = vmatprep.subr.mxu1 %v468_v41  ;;  %3320 = vmatpush3.msra.mxu0 %v349_v42  ;;  %v447_v1 = vld [vmem:[#allocation3 + $0x100] sm:$0xff]  ;;  %v566_v4 = vld [vmem:[#allocation3 + $0x278] sm:$0xff]  ;;  %v565_v8 = vld [vmem:[#allocation3 + $0x270] sm:$0xff] }
  0x43   : > { %3355 = vmatpush3.msra.mxu1 %v452_v43  ;;  %3321 = vmatprep.subr.mxu0 %v364_v44  ;;  %v670_v5 = vld [vmem:[#allocation3 + $0x378] sm:$0xff]  ;;  %v669_v9 = vld [vmem:[#allocation3 + $0x370] sm:$0xff]  ;;  %v580_v10 = vld [vmem:[#allocation3 + $0x2e8] sm:$0xff] }
  0x44   : > { %3356 = vmatprep.subr.mxu1 %v467_v45  ;;  %3322 = vmatpush3.msra.mxu0 %v348_v46  ;;  %v684_v11 = vld [vmem:[#allocation3 + $0x3e8] sm:$0xff]  ;;  %v579_v14 = vld [vmem:[#allocation3 + $0x2e0] sm:$0xff]  ;;  %v578_v18 = vld [vmem:[#allocation3 + $0x2d8] sm:$0xff] }
  0x45   : > { %3357 = vmatpush3.msra.mxu1 %v451_v47  ;;  %3323 = vmatprep.subr.mxu0 %v363_v48  ;;  %v564_v12 = vld [vmem:[#allocation3 + $0x268] sm:$0xff]  ;;  %v683_v15 = vld [vmem:[#allocation3 + $0x3e0] sm:$0xff]  ;;  %v682_v19 = vld [vmem:[#allocation3 + $0x3d8] sm:$0xff] }
  0x46   : > { %3358 = vmatprep.subr.mxu1 %v466_v49  ;;  %3324 = vmatpush3.msra.mxu0 %v347_v50  ;;  %v668_v13 = vld [vmem:[#allocation3 + $0x368] sm:$0xff]  ;;  %v563_v16 = vld [vmem:[#allocation3 + $0x260] sm:$0xff]  ;;  %v562_v20 = vld [vmem:[#allocation3 + $0x258] sm:$0xff] }
  0x47   : > { %3359 = vmatpush3.msra.mxu1 %v450_v51  ;;  %3325 = vmatprep.subr.mxu0 %v362_v52  ;;  %v667_v17 = vld [vmem:[#allocation3 + $0x360] sm:$0xff]  ;;  %v666_v21 = vld [vmem:[#allocation3 + $0x358] sm:$0xff]  ;;  %v577_v22 = vld [vmem:[#allocation3 + $0x2d0] sm:$0xff] }
  0x48   : > { %3360 = vmatprep.subr.mxu1 %v465_v53  ;;  %3326 = vmatpush3.msra.mxu0 %v346_v54  ;;  %v681_v23 = vld [vmem:[#allocation3 + $0x3d0] sm:$0xff]  ;;  %v576_v26 = vld [vmem:[#allocation3 + $0x2c8] sm:$0xff]  ;;  %v575_v30 = vld [vmem:[#allocation3 + $0x2c0] sm:$0xff] }
  0x49   : > { %3361 = vmatpush3.msra.mxu1 %v449_v55  ;;  %3327 = vmatprep.subr.mxu0 %v361_v57  ;;  %v561_v24 = vld [vmem:[#allocation3 + $0x250] sm:$0xff]  ;;  %v680_v27 = vld [vmem:[#allocation3 + $0x3c8] sm:$0xff]  ;;  %v679_v31 = vld [vmem:[#allocation3 + $0x3c0] sm:$0xff] }
  0x4a   : > { %3362 = vmatprep.subr.mxu1 %v464_v58  ;;  %3328 = vmatpush3.msra.mxu0 %v345_v59  ;;  %v665_v25 = vld [vmem:[#allocation3 + $0x350] sm:$0xff]  ;;  %v560_v28 = vld [vmem:[#allocation3 + $0x248] sm:$0xff]  ;;  %v559_v32 = vld [vmem:[#allocation3 + $0x240] sm:$0xff] }
  0x4b   : > { %3363 = vmatpush3.msra.mxu1 %v448_v60  ;;  %3329 = vmatprep.subr.mxu0 %v360_v61  ;;  %v664_v29 = vld [vmem:[#allocation3 + $0x348] sm:$0xff]  ;;  %v663_v33 = vld [vmem:[#allocation3 + $0x340] sm:$0xff]  ;;  %v574_v34 = vld [vmem:[#allocation3 + $0x2b8] sm:$0xff] }
  0x4c   : > { %3364 = vmatprep.subr.mxu1 %v463_v62  ;;  %3330 = vmatpush3.msra.mxu0 %v344_v0  ;;  %v678_v35 = vld [vmem:[#allocation3 + $0x3b8] sm:$0xff]  ;;  %v573_v38 = vld [vmem:[#allocation3 + $0x2b0] sm:$0xff]  ;;  %v572_v42 = vld [vmem:[#allocation3 + $0x2a8] sm:$0xff] }
  0x4d   : > { %440 = vmatprep.mubr.f32.mxu0 %v3854_v63  ;;  %3365 = vmatpush3.msra.mxu1 %v447_v1  ;;  %v558_v36 = vld [vmem:[#allocation3 + $0x238] sm:$0xff]  ;;  %v677_v39 = vld [vmem:[#allocation3 + $0x3b0] sm:$0xff]  ;;  %v676_v43 = vld [vmem:[#allocation3 + $0x3a8] sm:$0xff] }
  0x4e   : > { %543 = vmatprep.mubr.f32.mxu1 %v3854_v63  ;;  %441 = vmatmul.mubr.f32.vlgmr.msra.gmra.mxu0 %v3850_v56  ;;  %v662_v37 = vld [vmem:[#allocation3 + $0x338] sm:$0xff]  ;;  %v557_v40 = vld [vmem:[#allocation3 + $0x230] sm:$0xff]  ;;  %v556_v44 = vld [vmem:[#allocation3 + $0x228] sm:$0xff] }
  0x4f   : > { %544 = vmatmul.mubr.f32.vlgmr.msra.gmra.mxu1 %v3850_v56  ;;  %3369 = vmatprep.subr.mxu0 %v582_v2  ;;  %v661_v41 = vld [vmem:[#allocation3 + $0x330] sm:$0xff]  ;;  %v660_v45 = vld [vmem:[#allocation3 + $0x328] sm:$0xff]  ;;  %v571_v46 = vld [vmem:[#allocation3 + $0x2a0] sm:$0xff] }
  0x50   : > { %3404 = vmatprep.subr.mxu1 %v686_v3  ;;  %3370 = vmatpush3.msra.mxu0 %v566_v4  ;;  %v675_v47 = vld [vmem:[#allocation3 + $0x3a0] sm:$0xff]  ;;  %v570_v50 = vld [vmem:[#allocation3 + $0x298] sm:$0xff]  ;;  %v569_v54 = vld [vmem:[#allocation3 + $0x290] sm:$0xff] }
  0x51   : > { %3405 = vmatpush3.msra.mxu1 %v670_v5  ;;  %3371 = vmatprep.subr.mxu0 %v581_v6  ;;  %v555_v48 = vld [vmem:[#allocation3 + $0x220] sm:$0xff]  ;;  %v674_v51 = vld [vmem:[#allocation3 + $0x398] sm:$0xff]  ;;  %v673_v55 = vld [vmem:[#allocation3 + $0x390] sm:$0xff] }
  0x52   : > { %3406 = vmatprep.subr.mxu1 %v685_v7  ;;  %3372 = vmatpush3.msra.mxu0 %v565_v8  ;;  %v659_v49 = vld [vmem:[#allocation3 + $0x320] sm:$0xff]  ;;  %v554_v52 = vld [vmem:[#allocation3 + $0x218] sm:$0xff]  ;;  %v553_v57 = vld [vmem:[#allocation3 + $0x210] sm:$0xff]  ;;  %v3729_v8 = vmov 0.0  }
  0x53   : > { %3407 = vmatpush3.msra.mxu1 %v669_v9  ;;  %3373 = vmatprep.subr.mxu0 %v580_v10  ;;  %v658_v53 = vld [vmem:[#allocation3 + $0x318] sm:$0xff]  ;;  %v657_v58 = vld [vmem:[#allocation3 + $0x310] sm:$0xff]  ;;  %v568_v59 = vld [vmem:[#allocation3 + $0x288] sm:$0xff]  ;;  %337 = vst.msk [vmem:[#allocation2] sm:$0xff] %vm336_vm0, %v3729_v8 }
  0x54   : > { %3408 = vmatprep.subr.mxu1 %v684_v11  ;;  %3374 = vmatpush3.msra.mxu0 %v564_v12  ;;  %v672_v60 = vld [vmem:[#allocation3 + $0x388] sm:$0xff]  ;;  %v567_v0 = vld [vmem:[#allocation3 + $0x280] sm:$0xff]  ;;  %v3867_v4 = vld [vmem:[%s4158_s3 + $0x2] ss:$0 sm:$0xff] }
  0x55   : > { %3409 = vmatpush3.msra.mxu1 %v668_v13  ;;  %3375 = vmatprep.subr.mxu0 %v579_v14  ;;  %v552_v61 = vld [vmem:[#allocation3 + $0x208] sm:$0xff]  ;;  %v671_v1 = vld [vmem:[#allocation3 + $0x380] sm:$0xff]  ;;  %v3874_v5 = vld [vmem:[%s4158_s3 + $0x3] ss:$0 sm:$0xff] }
  0x56   : > { %3410 = vmatprep.subr.mxu1 %v683_v15  ;;  %3376 = vmatpush3.msra.mxu0 %v563_v16  ;;  %v656_v62 = vld [vmem:[#allocation3 + $0x308] sm:$0xff]  ;;  %v551_v2 = vld [vmem:[#allocation3 + $0x200] sm:$0xff]  ;;  %v3881_v6 = vld [vmem:[%s4158_s3 + $0x5] ss:$0 sm:$0xff] }
  0x57   : > { %3411 = vmatpush3.msra.mxu1 %v667_v17  ;;  %3377 = vmatprep.subr.mxu0 %v578_v18  ;;  %v655_v3 = vld [vmem:[#allocation3 + $0x300] sm:$0xff]  ;;  %v3888_v7 = vld [vmem:[%s4158_s3 + $0x7] ss:$0 sm:$0xff] }
  0x58   : > { %3412 = vmatprep.subr.mxu1 %v682_v19  ;;  %3378 = vmatpush3.msra.mxu0 %v562_v20 }
  0x59   : > { %3413 = vmatpush3.msra.mxu1 %v666_v21  ;;  %3379 = vmatprep.subr.mxu0 %v577_v22 }
  0x5a   : > { %3414 = vmatprep.subr.mxu1 %v681_v23  ;;  %3380 = vmatpush3.msra.mxu0 %v561_v24  ;;  %v3899_v24 = vld [vmem:[%s4158_s3 + $0x1] ss:$0 sm:$0xff] }
  0x5b   : > { %3415 = vmatpush3.msra.mxu1 %v665_v25  ;;  %3381 = vmatprep.subr.mxu0 %v576_v26  ;;  %v3906_v25 = vld [vmem:[%s4158_s3 + $0x4] ss:$0 sm:$0xff]  ;;  %v3913_v26 = vld [vmem:[%s4158_s3 + $0x6] ss:$0 sm:$0xff] }
  0x5c   : > { %3416 = vmatprep.subr.mxu1 %v680_v27  ;;  %3382 = vmatpush3.msra.mxu0 %v560_v28  ;;  %v3920_v27 = vld [vmem:[%s4158_s3 + $0x8] ss:$0 sm:$0xff] }
  0x5d   : > { %3417 = vmatpush3.msra.mxu1 %v664_v29  ;;  %3383 = vmatprep.subr.mxu0 %v575_v30 }
  0x5e   : > { %3418 = vmatprep.subr.mxu1 %v679_v31  ;;  %3384 = vmatpush3.msra.mxu0 %v559_v32 }
  0x5f   : > { %3419 = vmatpush3.msra.mxu1 %v663_v33  ;;  %3385 = vmatprep.subr.mxu0 %v574_v34 }
  0x60   : > { %3420 = vmatprep.subr.mxu1 %v678_v35  ;;  %3386 = vmatpush3.msra.mxu0 %v558_v36 }
  0x61   : > { %3421 = vmatpush3.msra.mxu1 %v662_v37  ;;  %3387 = vmatprep.subr.mxu0 %v573_v38 }
  0x62   : > { %3422 = vmatprep.subr.mxu1 %v677_v39  ;;  %3388 = vmatpush3.msra.mxu0 %v557_v40 }
  0x63   : > { %3423 = vmatpush3.msra.mxu1 %v661_v41  ;;  %3389 = vmatprep.subr.mxu0 %v572_v42 }
  0x64   : > { %3424 = vmatprep.subr.mxu1 %v676_v43  ;;  %3390 = vmatpush3.msra.mxu0 %v556_v44 }
  0x65   : > { %3425 = vmatpush3.msra.mxu1 %v660_v45  ;;  %3391 = vmatprep.subr.mxu0 %v571_v46  ;;  %v3210_v46 = vld [vmem:[%s4159_s4 + $0x8] sm:$0xff] }
  0x66   : > { %3426 = vmatprep.subr.mxu1 %v675_v47  ;;  %3392 = vmatpush3.msra.mxu0 %v555_v48  ;;  %v3942_v47 = vld [vmem:[%s4158_s3] ss:$0 sm:$0xff] }
  0x67   : > { %3427 = vmatpush3.msra.mxu1 %v659_v49  ;;  %3393 = vmatprep.subr.mxu0 %v570_v50 }
  0x68   : > { %3428 = vmatprep.subr.mxu1 %v674_v51  ;;  %3394 = vmatpush3.msra.mxu0 %v554_v52  ;;  %v3217_v51 = vld [vmem:[%s4159_s4 + $0x10] sm:$0xff]  ;;  %v773_v52 = vld [vmem:[%s4159_s4] sm:$0xff] }
  0x69   : > { %3429 = vmatpush3.msra.mxu1 %v658_v53  ;;  %3395 = vmatprep.subr.mxu0 %v569_v54 }
  0x6a   : > { %3430 = vmatprep.subr.mxu1 %v673_v55  ;;  %3396 = vmatpush3.msra.mxu0 %v553_v57  ;;  %v3227_v55 = vld [vmem:[%s4159_s4 + $0x20] sm:$0xff]  ;;  %v3222_v57 = vld [vmem:[%s4159_s4 + $0x18] sm:$0xff] }
  0x6b   : > { %3431 = vmatpush3.msra.mxu1 %v657_v58  ;;  %3397 = vmatprep.subr.mxu0 %v568_v59 }
  0x6c   : > { %3432 = vmatprep.subr.mxu1 %v672_v60  ;;  %3398 = vmatpush3.msra.mxu0 %v552_v61  ;;  %v3237_v60 = vld [vmem:[%s4159_s4 + $0x30] sm:$0xff]  ;;  %v3232_v61 = vld [vmem:[%s4159_s4 + $0x28] sm:$0xff] }
  0x6d   : > { %3433 = vmatpush3.msra.mxu1 %v656_v62  ;;  %3399 = vmatprep.subr.mxu0 %v567_v0 }
  0x6e   : > { %3434 = vmatprep.subr.mxu1 %v671_v1  ;;  %3400 = vmatpush3.msra.mxu0 %v551_v2  ;;  %v3247_v1 = vld [vmem:[%s4159_s4 + $0x40] sm:$0xff]  ;;  %v3242_v2 = vld [vmem:[%s4159_s4 + $0x38] sm:$0xff] }
  0x6f   : > { %647 = vmatprep.mubr.f32.mxu0 %v3854_v63  ;;  %3435 = vmatpush3.msra.mxu1 %v655_v3 }
  0x70   : > { %751 = vmatprep.mubr.f32.mxu1 %v3854_v63  ;;  %648 = vmatmul.mubr.f32.vlgmr.msra.gmra.mxu0 %v3850_v56 }
  0x71   : > { %752 = vmatmul.mubr.f32.vlgmr.msra.gmra.mxu1 %v3850_v56  ;;  %950 = vrot.lane.b32.xlu1 %v3867_v4, %s3725_s9 }
  0x72   : > { %3483 = vmatprep.subr.mxu1 %v3729_v8  ;;  %3493 = vmatprep.subr.mxu0 %v3729_v8 }
  0x73   : > { %3485 = vmatprep.mubr.msk.f32.mxu1 %vm3734_vm2, %v3729_v8  ;;  %3495 = vmatprep.mubr.msk.f32.mxu0 %vm3734_vm2, %v3729_v8 }
  0x75   : > { %1042 = vrot.lane.b32.xlu1 %v3874_v5, %s3726_s12 }
  0x79   : > { %1226 = vrot.lane.b32.xlu1 %v3881_v6, %s3727_s15 }
  0x7d   : > { %1410 = vrot.lane.b32.xlu1 %v3888_v7, %s3728_s18 }
  0xe3   : > { %v951_v28 = vpop.permute.xlu1 %950 }
  0xe7   : > { %v1043_v31 = vpop.permute.xlu1 %1042 }
  0xeb   : > { %v1227_v36 = vpop.permute.xlu1 %1226 }
  0xef   : > { %v1411_v41 = vpop.permute.xlu1 %1410 }
 0x10e   : > { %v3331_v9 = vpop.f32.mrf.mxu0 }
 0x10f   : > { %v3366_v10 = vpop.f32.mrf.mxu1 }
 0x110   : > { %v3332_v11 = vpop.f32.mrf.mxu0 }
 0x111   : > { %v3367_v12 = vpop.f32.mrf.mxu1  ;;  %v3333_v13 = vadd.f32 %v3332_v11, %v3331_v9 }
 0x112   : > { %v3368_v14 = vadd.f32 %v3367_v12, %v3366_v10 }
 0x114   : > { %v549_v19 = vmax.f32 %v3333_v13, %v3368_v14 }
 0x130   : > { %v3401_v15 = vpop.f32.mrf.mxu0 }
 0x131   : > { %v3436_v16 = vpop.f32.mrf.mxu1 }
 0x132   : > { %v3402_v17 = vpop.f32.mrf.mxu0 }
 0x133   : > { %v3437_v18 = vpop.f32.mrf.mxu1  ;;  %v3403_v20 = vadd.f32 %v3402_v17, %v3401_v15 }
 0x134   : > { %v3438_v22 = vadd.f32 %v3437_v18, %v3436_v16 }
 0x135   : > { %v653_v21 = vmax.f32 %v549_v19, %v3403_v20 }
 0x137   : > { %v757_v23 = vmax.f32 %v653_v21, %v3438_v22 }
 0x139   : > { %759 = vrot.lane.b32.xlu0 %v757_v23, %s3730_s19 }
 0x13d   : > { %781 = vrot.lane.b32.xlu0 %v3899_v24, %s3731_s22 }
 0x141   : > { %1134 = vrot.lane.b32.xlu0 %v3906_v25, %s3730_s19 }
 0x145   : > { %1318 = vrot.lane.b32.xlu0 %v3913_v26, %s3732_s28 }
 0x149   : > { %1502 = vrot.lane.b32.xlu0 %v3920_v27, %s3733_s11 }
 0x1ab   : > { %v760_v29 = vpop.permute.xlu0 %759 }
 0x1ac   : > { %763 = vst.msk [vmem:[#allocation2] sm:$0xf] %vm762_vm1, %v760_v29 }
 0x1af   : > { %v782_v30 = vpop.permute.xlu0 %781 }
 0x1b3   : > { %v764_v32 = vld [vmem:[#allocation2] sm:$0xf]  ;;  %v1135_v33 = vpop.permute.xlu0 %1134 }
 0x1b4   : > { %v784_v34 = vmul.f32 %v782_v30, %v764_v32  ;;  %v953_v35 = vmul.f32 %v951_v28, %v764_v32  ;;  %v1045_v38 = vmul.f32 %v1043_v31, %v764_v32  ;;  %v1137_v39 = vmul.f32 %v1135_v33, %v764_v32 }
 0x1b5   : > { %v1229_v40 = vmul.f32 %v1227_v36, %v764_v32  ;;  %v1413_v44 = vmul.f32 %v1411_v41, %v764_v32  ;;  %v772_v50 = vmul.f32 %v3942_v47, %v764_v32 }
 0x1b6   : > { %788 = vrot.lane.b32.xlu1 %v784_v34, %s3735_s13  ;;  %957 = vrot.lane.b32.xlu0 %v953_v35, %s3736_s14 }
 0x1b7   : > { %v1319_v37 = vpop.permute.xlu0 %1318 }
 0x1b8   : > { %v1321_v42 = vmul.f32 %v1319_v37, %v764_v32 }
 0x1ba   : > { %1049 = vrot.lane.b32.xlu1 %v1045_v38, %s3737_s16  ;;  %1141 = vrot.lane.b32.xlu0 %v1137_v39, %s3738_s17 }
 0x1bb   : > { %v1503_v43 = vpop.permute.xlu0 %1502 }
 0x1bc   : > { %v1505_v45 = vmul.f32 %v1503_v43, %v764_v32 }
 0x1be   : > { %1233 = vrot.lane.b32.xlu1 %v1229_v40, %s3739_s20  ;;  %1325 = vrot.lane.b32.xlu0 %v1321_v42, %s3740_s21 }
 0x1c2   : > { %1417 = vrot.lane.b32.xlu1 %v1413_v44, %s4165_s23  ;;  %1509 = vrot.lane.b32.xlu0 %v1505_v45, %s4164_s24 }
 0x228   : > { %v789_v48 = vpop.permute.xlu1 %788  ;;  %v958_v49 = vpop.permute.xlu0 %957 }
 0x229   : > { %3484 = vmatpush3.msk.msra.mxu1 %vm794_vm3, %v789_v48  ;;  %3494 = vmatpush3.msk.msra.mxu0 %vm794_vm3, %v958_v49 }
 0x22a   : > { %3486 = vmatmul.mubr.msk.f32.vlgmr.msra.gmra.mxu1 %vm790_vm4, %v3210_v46  ;;  %3488 = vmatprep.subr.mxu1 %v3729_v8 }
 0x22b   : > { %3503 = vmatprep.subr.mxu0 %v3729_v8  ;;  %3489 = vmatpush3.msk.msra.mxu1 %vm794_vm3, %v772_v50 }
 0x22c   : > { %v1050_v53 = vpop.permute.xlu1 %1049  ;;  %3490 = vmatprep.mubr.msk.f32.mxu1 %vm3734_vm2, %v3729_v8  ;;  %v1142_v54 = vpop.permute.xlu0 %1141  ;;  %3496 = vmatmul.mubr.msk.f32.vlgmr.msra.gmra.mxu0 %vm790_vm4, %v3217_v51 }
 0x22d   : > { %3498 = vmatprep.subr.mxu1 %v3729_v8  ;;  %3504 = vmatpush3.msk.msra.mxu0 %vm794_vm3, %v1142_v54 }
 0x22e   : > { %3491 = vmatmul.mubr.msk.f32.vlgmr.msra.gmra.mxu1 %vm790_vm4, %v773_v52  ;;  %3505 = vmatprep.mubr.msk.f32.mxu0 %vm3734_vm2, %v3729_v8 }
 0x22f   : > { %3499 = vmatpush3.msk.msra.mxu1 %vm794_vm3, %v1050_v53  ;;  %3513 = vmatprep.subr.mxu0 %v3729_v8 }
 0x230   : > { %v1234_v58 = vpop.permute.xlu1 %1233  ;;  %3500 = vmatprep.mubr.msk.f32.mxu1 %vm3734_vm2, %v3729_v8  ;;  %v1326_v59 = vpop.permute.xlu0 %1325  ;;  %3506 = vmatmul.mubr.msk.f32.vlgmr.msra.gmra.mxu0 %vm790_vm4, %v3227_v55 }
 0x231   : > { %3508 = vmatprep.subr.mxu1 %v3729_v8  ;;  %3514 = vmatpush3.msk.msra.mxu0 %vm794_vm3, %v1326_v59 }
 0x232   : > { %3501 = vmatmul.mubr.msk.f32.vlgmr.msra.gmra.mxu1 %vm790_vm4, %v3222_v57  ;;  %3515 = vmatprep.mubr.msk.f32.mxu0 %vm3734_vm2, %v3729_v8 }
 0x233   : > { %3509 = vmatpush3.msk.msra.mxu1 %vm794_vm3, %v1234_v58  ;;  %3523 = vmatprep.subr.mxu0 %v3729_v8 }
 0x234   : > { %v1418_v62 = vpop.permute.xlu1 %1417  ;;  %3510 = vmatprep.mubr.msk.f32.mxu1 %vm3734_vm2, %v3729_v8  ;;  %v1510_v0 = vpop.permute.xlu0 %1509  ;;  %3516 = vmatmul.mubr.msk.f32.vlgmr.msra.gmra.mxu0 %vm790_vm4, %v3237_v60 }
 0x235   : > { %3518 = vmatprep.subr.mxu1 %v3729_v8  ;;  %3524 = vmatpush3.msk.msra.mxu0 %vm794_vm3, %v1510_v0 }
 0x236   : > { %3511 = vmatmul.mubr.msk.f32.vlgmr.msra.gmra.mxu1 %vm790_vm4, %v3232_v61  ;;  %3525 = vmatprep.mubr.msk.f32.mxu0 %vm3734_vm2, %v3729_v8 }
 0x237   : > { %3519 = vmatpush3.msk.msra.mxu1 %vm794_vm3, %v1418_v62  ;;  %3520 = vmatprep.mubr.msk.f32.mxu1 %vm3734_vm2, %v3729_v8 }
 0x238   : > { %3533 = vmatprep.subr.mxu0 %v3729_v8  ;;  %3526 = vmatmul.mubr.msk.f32.vlgmr.msra.gmra.mxu0 %vm790_vm4, %v3247_v1 }
 0x239   : > { %3528 = vmatprep.subr.mxu1 %v3729_v8  ;;  %3535 = vmatprep.mubr.msk.f32.mxu0 %vm3734_vm2, %v3729_v8 }
 0x23a   : > { %3521 = vmatmul.mubr.msk.f32.vlgmr.msra.gmra.mxu1 %vm790_vm4, %v3242_v2 }
 0x23b   : > { %3530 = vmatprep.mubr.msk.f32.mxu1 %vm3734_vm2, %v3729_v8 }
 0x2ea   : > { %v863_v3 = vpop.f32.mrf.mxu1 }
 0x2ec   : > { %v3487_v9 = vpop.f32.mrf.mxu1  ;;  %v1030_v10 = vpop.f32.mrf.mxu0 }
 0x2ed   : > { %v3253_v9 = vld [vmem:[%s4160_s5 + $0x8] sm:$0xff] }
 0x2ee   : > { %v939_v11 = vpop.f32.mrf.mxu1  ;;  %v3497_v13 = vpop.f32.mrf.mxu0 }
 0x2ef   : > { %v940_v12 = vadd.f32 %v939_v11, %v863_v3  ;;  %v3262_v13 = vld [vmem:[%s4160_s5 + $0x18] sm:$0xff] }
 0x2f0   : > { %v3492_v14 = vpop.f32.mrf.mxu1  ;;  %v1214_v16 = vpop.f32.mrf.mxu0 }
 0x2f1   : > { %v1034_v15 = vadd.f32 %v1030_v10, %v940_v12  ;;  %v3258_v12 = vld [vmem:[%s4160_s5 + $0x10] sm:$0xff] }
 0x2f2   : > { %v1122_v17 = vpop.f32.mrf.mxu1  ;;  %v3507_v19 = vpop.f32.mrf.mxu0 }
 0x2f3   : > { %v1126_v18 = vadd.f32 %v1122_v17, %v1034_v15  ;;  %v3270_v17 = vld [vmem:[%s4160_s5 + $0x28] sm:$0xff] }
 0x2f4   : > { %v3502_v20 = vpop.f32.mrf.mxu1  ;;  %v1398_v22 = vpop.f32.mrf.mxu0 }
 0x2f5   : > { %v1218_v21 = vadd.f32 %v1214_v16, %v1126_v18  ;;  %v3266_v16 = vld [vmem:[%s4160_s5 + $0x20] sm:$0xff]  ;;  %v3274_v20 = vld [vmem:[%s4160_s5 + $0x30] sm:$0xff] }
 0x2f6   : > { %v1306_v23 = vpop.f32.mrf.mxu1  ;;  %v3517_v29 = vpop.f32.mrf.mxu0 }
 0x2f7   : > { %v1310_v28 = vadd.f32 %v1306_v23, %v1218_v21  ;;  %v3278_v21 = vld [vmem:[%s4160_s5 + $0x38] sm:$0xff] }
 0x2f8   : > { %v3512_v30 = vpop.f32.mrf.mxu1  ;;  %v1582_v32 = vpop.f32.mrf.mxu0 }
 0x2f9   : > { %v1402_v31 = vadd.f32 %v1398_v22, %v1310_v28  ;;  %v3282_v28 = vld [vmem:[%s4160_s5 + $0x40] sm:$0xff] }
 0x2fa   : > { %v1490_v33 = vpop.f32.mrf.mxu1  ;;  %v3527_v35 = vpop.f32.mrf.mxu0 }
 0x2fb   : > { %v1494_v34 = vadd.f32 %v1490_v33, %v1402_v31 }
 0x2fc   : > { %v3522_v36 = vpop.f32.mrf.mxu1 }
 0x2fd   : > { %v1586_v37 = vadd.f32 %v1582_v32, %v1494_v34 }
 0x2ff   : > { %v1588_v38 = vsel %vm1587_vm5, %v1586_v37, 0.0  ;;  %v1592_v39 = vmul.f32 %v1586_v37, %v1586_v37 }
 0x300   : > { %1589 = vadd.xlane.f32.xlu1 %v1588_v38 }
 0x301   : > { %v1593_v40 = vsel %vm1587_vm5, %v1592_v39, 0.0 }
 0x302   : > { %1594 = vadd.xlane.f32.xlu0 %v1593_v40 }
 0x311   : > { %1629 = vrot.lane.b32.xlu1 %v3899_v24, %s3731_s22 }
 0x315   : > { %1792 = vrot.lane.b32.xlu1 %v3867_v4, %s3725_s9 }
 0x319   : > { %1972 = vrot.lane.b32.xlu1 %v3906_v25, %s3730_s19 }
 0x31d   : > { %2152 = vrot.lane.b32.xlu1 %v3913_v26, %s3732_s28 }
 0x321   : > { %2332 = vrot.lane.b32.xlu1 %v3920_v27, %s3733_s11 }
 0x389   : > { %v1590_v41 = vpop.xlane.xlu1 %1589 }
 0x38a   : > { %v1591_v42 = vmul.f32 0.015625, %v1590_v41 }
 0x38b   : > { %v1595_v43 = vpop.xlane.xlu0 %1594 }
 0x38c   : > { %v1597_v44 = vmul.f32 %v1591_v42, %v1591_v42  ;;  %v1596_v45 = vmul.f32 0.015625, %v1595_v43  ;;  %v1599_v49 = vsub.f32 %v1586_v37, %v1591_v42 }
 0x38d   : > { %v1630_v26 = vpop.permute.xlu1 %1629 }
 0x38e   : > { %v1598_v46 = vsub.f32 %v1596_v45, %v1597_v44 }
 0x390   : > { %v1600_v48 = vmax.f32 %v1598_v46, 0.0 }
 0x391   : > { %v1793_v52 = vpop.permute.xlu1 %1792 }
 0x392   : > { %v1601_v24 = vadd.f32 1e-05, %v1600_v48 }
 0x394   : > { %3647 = vrsqrt.f32 %v1601_v24 }
 0x395   : > { %v1973_v55 = vpop.permute.xlu1 %1972 }
 0x399   : > { %v2153_v60 = vpop.permute.xlu1 %2152 }
 0x39d   : > { %v2333_v1 = vpop.permute.xlu1 %2332 }
 0x3a1   : > { %v3648_v4 = vpop.eup %3647 }
 0x3a2   : > { %v1603_v50 = vmul.f32 %v3648_v4, %v1599_v49 }
 0x3a4   : > { %vm1604_vm6 = vcmp.ge.f32.partialorder %v1603_v50, 0.0  ;;  %v1605_v25 = vmul.f32 0.01, %v1603_v50 }
 0x3a6   : > { %v1606_v51 = vsel %vm1604_vm6, %v1603_v50, %v1605_v25 }
 0x3a7   : > { %1608 = vrot.lane.b32.xlu0 %v1606_v51, %s3730_s19 }
 0x3ab   : > { %1882 = vrot.lane.b32.xlu0 %v3874_v5, %s3726_s12  ;;  %v1622_v5 = vld [vmem:[%s4160_s5] sm:$0xff] }
 0x3af   : > { %2062 = vrot.lane.b32.xlu0 %v3881_v6, %s3727_s15  ;;  %s4168_s15 = smov 111  }
 0x3b3   : > { %2242 = vrot.lane.b32.xlu0 %v3888_v7, %s3728_s18  ;;  %s4169_s18 = smov 110  }
 0x419   : > { %v1609_v27 = vpop.permute.xlu0 %1608 }
 0x41a   : > { %1612 = vst.msk [vmem:[#allocation2] sm:$0xff] %vm1611_vm7, %v1609_v27 }
 0x41d   : > { %v1883_v53 = vpop.permute.xlu0 %1882 }
 0x421   : > { %v1613_v54 = vld [vmem:[#allocation2] sm:$0xff]  ;;  %v2063_v6 = vpop.permute.xlu0 %2062 }
 0x422   : > { %v1621_v57 = vmul.f32 %v3942_v47, %v1613_v54  ;;  %v1632_v58 = vmul.f32 %v1630_v26, %v1613_v54  ;;  %v1795_v59 = vmul.f32 %v1793_v52, %v1613_v54  ;;  %v1885_v7 = vmul.f32 %v1883_v53, %v1613_v54 }
 0x423   : > { %v1975_v47 = vmul.f32 %v1973_v55, %v1613_v54  ;;  %v2065_v61 = vmul.f32 %v2063_v6, %v1613_v54  ;;  %v2155_v62 = vmul.f32 %v2153_v60, %v1613_v54  ;;  %v2335_v3 = vmul.f32 %v2333_v1, %v1613_v54  ;;  %v2435_v1 = vld [vmem:[%s4161_s6] sm:$0xf] }
 0x424   : > { %3534 = vmatpush3.msra.mxu0 %v1621_v57  ;;  %1636 = vrot.lane.b32.xlu0 %v1632_v58, %s3735_s13 }
 0x425   : > { %1799 = vrot.lane.b32.xlu1 %v1795_v59, %s3736_s14  ;;  %3536 = vmatmul.mubr.msk.f32.vlgmr.msra.gmra.mxu0 %vm1639_vm8, %v1622_v5  ;;  %v2243_v0 = vpop.permute.xlu0 %2242 }
 0x426   : > { %3543 = vmatprep.subr.mxu0 %v3729_v8  ;;  %3545 = vmatprep.mubr.msk.f32.mxu0 %vm3734_vm2, %v3729_v8  ;;  %v2245_v2 = vmul.f32 %v2243_v0, %v1613_v54  ;;  %v3285_v0 = vld [vmem:[%s4161_s6 + $0x4] sm:$0xf] }
 0x428   : > { %1889 = vrot.lane.b32.xlu0 %v1885_v7, %s3737_s16  ;;  %s3298_s16 = sshll.u32 %s4171_s30, 4 }
 0x429   : > { %1979 = vrot.lane.b32.xlu1 %v1975_v47, %s3738_s17 }
 0x42c   : > { %2069 = vrot.lane.b32.xlu0 %v2065_v61, %s3739_s20 }
 0x42d   : > { %2159 = vrot.lane.b32.xlu1 %v2155_v62, %s3740_s21  ;;  %s335_s21 = scalar_lea.vmem %s4163_s8, %s3298_s16 }
 0x42e   : > { %342 = vst [vmem:[%s335_s21] sm:$0xf] %v3850_v56  ;;  %343 = vst [vmem:[%s335_s21 + $0x8] sm:$0xf] %v3854_v63 }
 0x430   : > { %2249 = vrot.lane.b32.xlu0 %v2245_v2, %s4168_s15 }
 0x431   : > { %2339 = vrot.lane.b32.xlu1 %v2335_v3, %s4169_s18  ;;  %v2616_v3 = vld [vmem:[#allocation5 + $0xf8] sm:$0xff] }
 0x496   : > { %v1637_v10 = vpop.permute.xlu0 %1636 }
 0x497   : > { %v1800_v11 = vpop.permute.xlu1 %1799  ;;  %3529 = vmatpush3.msra.mxu1 %v1637_v10  ;;  %v2615_v10 = vld [vmem:[#allocation5 + $0xf0] sm:$0xff] }
 0x498   : > { %3531 = vmatmul.mubr.msk.f32.vlgmr.msra.gmra.mxu1 %vm1639_vm8, %v3253_v9  ;;  %3538 = vmatprep.subr.mxu1 %v3729_v8  ;;  %v2524_v9 = vld [vmem:[#allocation5 + $0x78] sm:$0xff] }
 0x499   : > { %3539 = vmatpush3.msra.mxu1 %v1800_v11  ;;  %3540 = vmatprep.mubr.msk.f32.mxu1 %vm3734_vm2, %v3729_v8  ;;  %v2523_v11 = vld [vmem:[#allocation5 + $0x70] sm:$0xff] }
 0x49a   : > { %v1890_v14 = vpop.permute.xlu0 %1889  ;;  %3548 = vmatprep.subr.mxu1 %v3729_v8 }
 0x49b   : > { %v1980_v15 = vpop.permute.xlu1 %1979  ;;  %3544 = vmatpush3.msra.mxu0 %v1890_v14  ;;  %v2613_v14 = vld [vmem:[#allocation5 + $0xe0] sm:$0xff] }
 0x49c   : > { %3541 = vmatmul.mubr.msk.f32.vlgmr.msra.gmra.mxu1 %vm1639_vm8, %v3258_v12  ;;  %3546 = vmatmul.mubr.msk.f32.vlgmr.msra.gmra.mxu0 %vm1639_vm8, %v3262_v13  ;;  %v2614_v12 = vld [vmem:[#allocation5 + $0xe8] sm:$0xff] }
 0x49d   : > { %3549 = vmatpush3.msra.mxu1 %v1980_v15  ;;  %3553 = vmatprep.subr.mxu0 %v3729_v8  ;;  %v2522_v13 = vld [vmem:[#allocation5 + $0x68] sm:$0xff]  ;;  %v2521_v15 = vld [vmem:[#allocation5 + $0x60] sm:$0xff] }
 0x49e   : > { %v2070_v18 = vpop.permute.xlu0 %2069  ;;  %3550 = vmatprep.mubr.msk.f32.mxu1 %vm3734_vm2, %v3729_v8  ;;  %3555 = vmatprep.mubr.msk.f32.mxu0 %vm3734_vm2, %v3729_v8 }
 0x49f   : > { %v2160_v19 = vpop.permute.xlu1 %2159  ;;  %3554 = vmatpush3.msra.mxu0 %v2070_v18  ;;  %3558 = vmatprep.subr.mxu1 %v3729_v8  ;;  %v2611_v18 = vld [vmem:[#allocation5 + $0xd0] sm:$0xff] }
 0x4a0   : > { %3551 = vmatmul.mubr.msk.f32.vlgmr.msra.gmra.mxu1 %vm1639_vm8, %v3266_v16  ;;  %3556 = vmatmul.mubr.msk.f32.vlgmr.msra.gmra.mxu0 %vm1639_vm8, %v3270_v17  ;;  %v2612_v16 = vld [vmem:[#allocation5 + $0xd8] sm:$0xff] }
 0x4a1   : > { %3559 = vmatpush3.msra.mxu1 %v2160_v19  ;;  %3563 = vmatprep.subr.mxu0 %v3729_v8  ;;  %v2520_v17 = vld [vmem:[#allocation5 + $0x58] sm:$0xff]  ;;  %v2519_v19 = vld [vmem:[#allocation5 + $0x50] sm:$0xff] }
 0x4a2   : > { %v2250_v22 = vpop.permute.xlu0 %2249  ;;  %3560 = vmatprep.mubr.msk.f32.mxu1 %vm3734_vm2, %v3729_v8  ;;  %3565 = vmatprep.mubr.msk.f32.mxu0 %vm3734_vm2, %v3729_v8 }
 0x4a3   : > { %v2340_v23 = vpop.permute.xlu1 %2339  ;;  %3564 = vmatpush3.msra.mxu0 %v2250_v22  ;;  %3568 = vmatprep.subr.mxu1 %v3729_v8  ;;  %v2609_v22 = vld [vmem:[#allocation5 + $0xc0] sm:$0xff] }
 0x4a4   : > { %3561 = vmatmul.mubr.msk.f32.vlgmr.msra.gmra.mxu1 %vm1639_vm8, %v3274_v20  ;;  %3566 = vmatmul.mubr.msk.f32.vlgmr.msra.gmra.mxu0 %vm1639_vm8, %v3278_v21  ;;  %v2610_v20 = vld [vmem:[#allocation5 + $0xc8] sm:$0xff] }
 0x4a5   : > { %3569 = vmatpush3.msra.mxu1 %v2340_v23  ;;  %3570 = vmatprep.mubr.msk.f32.mxu1 %vm3734_vm2, %v3729_v8  ;;  %v2518_v21 = vld [vmem:[#allocation5 + $0x48] sm:$0xff]  ;;  %v2517_v23 = vld [vmem:[#allocation5 + $0x40] sm:$0xff] }
 0x4a6   : > { %3573 = vmatprep.subr.mxu0 %v3729_v8  ;;  %3578 = vmatprep.subr.mxu1 %v3729_v8 }
 0x4a7   : > { %3575 = vmatprep.mubr.msk.f32.mxu0 %vm3734_vm2, %v3729_v8 }
 0x4a8   : > { %3571 = vmatmul.mubr.msk.f32.vlgmr.msra.gmra.mxu1 %vm1639_vm8, %v3282_v28  ;;  %v2608_v28 = vld [vmem:[#allocation5 + $0xb8] sm:$0xff] }
 0x4a9   : > { %3580 = vmatprep.mubr.msk.f32.mxu1 %vm3734_vm2, %v3729_v8 }
 0x4e5   : > { %v1782_v29 = vpop.f32.mrf.mxu0 }
 0x4e7   : > { %v3537_v30 = vpop.f32.mrf.mxu0 }
 0x4e8   : > { %v2607_v30 = vld [vmem:[#allocation5 + $0xb0] sm:$0xff] }
 0x558   : > { %v1709_v31 = vpop.f32.mrf.mxu1 }
 0x559   : > { %v1783_v33 = vadd.f32 %v1782_v29, %v1709_v31  ;;  %v2516_v29 = vld [vmem:[#allocation5 + $0x38] sm:$0xff]  ;;  %v2515_v31 = vld [vmem:[#allocation5 + $0x30] sm:$0xff] }
 0x55a   : > { %v3532_v32 = vpop.f32.mrf.mxu1 }
 0x55b   : > { %v2606_v32 = vld [vmem:[#allocation5 + $0xa8] sm:$0xff] }
 0x55c   : > { %v1871_v34 = vpop.f32.mrf.mxu1  ;;  %v1961_v35 = vpop.f32.mrf.mxu0 }
 0x55d   : > { %v1875_v36 = vadd.f32 %v1871_v34, %v1783_v33  ;;  %v2514_v33 = vld [vmem:[#allocation5 + $0x28] sm:$0xff]  ;;  %v2605_v34 = vld [vmem:[#allocation5 + $0xa0] sm:$0xff] }
 0x55e   : > { %v3542_v37 = vpop.f32.mrf.mxu1  ;;  %v3547_v38 = vpop.f32.mrf.mxu0 }
 0x55f   : > { %v1965_v39 = vadd.f32 %v1961_v35, %v1875_v36  ;;  %v2513_v35 = vld [vmem:[#allocation5 + $0x20] sm:$0xff]  ;;  %v2604_v36 = vld [vmem:[#allocation5 + $0x98] sm:$0xff]  ;;  %v2603_v38 = vld [vmem:[#allocation5 + $0x90] sm:$0xff] }
 0x560   : > { %v2051_v40 = vpop.f32.mrf.mxu1  ;;  %v2141_v41 = vpop.f32.mrf.mxu0  ;;  %v2512_v37 = vld [vmem:[#allocation5 + $0x18] sm:$0xff] }
 0x561   : > { %v2055_v42 = vadd.f32 %v2051_v40, %v1965_v39  ;;  %v2511_v39 = vld [vmem:[#allocation5 + $0x10] sm:$0xff]  ;;  %v2602_v40 = vld [vmem:[#allocation5 + $0x88] sm:$0xff] }
 0x562   : > { %v3552_v43 = vpop.f32.mrf.mxu1  ;;  %v3557_v44 = vpop.f32.mrf.mxu0 }
 0x563   : > { %v2145_v45 = vadd.f32 %v2141_v41, %v2055_v42  ;;  %v2601_v41 = vld [vmem:[#allocation5 + $0x80] sm:$0xff]  ;;  %v2510_v42 = vld [vmem:[#allocation5 + $0x8] sm:$0xff]  ;;  %v2856_v44 = vld [vmem:[#allocation5 + $0x178] sm:$0xff] }
 0x564   : > { %v2231_v46 = vpop.f32.mrf.mxu1  ;;  %v2321_v48 = vpop.f32.mrf.mxu0  ;;  %v2509_v43 = vld [vmem:[#allocation5] sm:$0xff] }
 0x565   : > { %v2235_v24 = vadd.f32 %v2231_v46, %v2145_v45 }
 0x566   : > { %v3562_v49 = vpop.f32.mrf.mxu1  ;;  %v3567_v4 = vpop.f32.mrf.mxu0 }
 0x567   : > { %v2325_v50 = vadd.f32 %v2321_v48, %v2235_v24  ;;  %v2855_v48 = vld [vmem:[#allocation5 + $0x170] sm:$0xff]  ;;  %v2854_v24 = vld [vmem:[#allocation5 + $0x168] sm:$0xff]  ;;  %v3289_v4 = vld [vmem:[%s4161_s6 + $0x8] sm:$0xf] }
 0x568   : > { %v2411_v25 = vpop.f32.mrf.mxu1 }
 0x569   : > { %v2415_v51 = vadd.f32 %v2411_v25, %v2325_v50  ;;  %v2853_v25 = vld [vmem:[#allocation5 + $0x160] sm:$0xff] }
 0x56a   : > { %v3572_v26 = vpop.f32.mrf.mxu1 }
 0x56b   : > { %v2416_v27 = vsel %vm1587_vm5, %v2415_v51, 0.0  ;;  %v2420_v52 = vmul.f32 %v2415_v51, %v2415_v51  ;;  %v3024_v26 = vld [vmem:[#allocation5 + $0x1f8] sm:$0xff] }
 0x56c   : > { %2417 = vadd.xlane.f32.xlu0 %v2416_v27  ;;  %v2851_v27 = vld [vmem:[#allocation5 + $0x150] sm:$0xff] }
 0x56d   : > { %v2421_v53 = vsel %vm1587_vm5, %v2420_v52, 0.0  ;;  %v3292_v52 = vld [vmem:[%s4161_s6 + $0xc] sm:$0xf] }
 0x56e   : > { %2422 = vadd.xlane.f32.xlu1 %v2421_v53  ;;  %v2850_v53 = vld [vmem:[#allocation5 + $0x148] sm:$0xff] }
 0x5f5   : > { %v2418_v54 = vpop.xlane.xlu0 %2417 }
 0x5f6   : > { %v2419_v55 = vmul.f32 0.015625, %v2418_v54  ;;  %v3023_v54 = vld [vmem:[#allocation5 + $0x1f0] sm:$0xff] }
 0x5f7   : > { %v2423_v57 = vpop.xlane.xlu1 %2422 }
 0x5f8   : > { %v2425_v58 = vmul.f32 %v2419_v55, %v2419_v55  ;;  %v2424_v59 = vmul.f32 0.015625, %v2423_v57  ;;  %v2427_v60 = vsub.f32 %v2415_v51, %v2419_v55  ;;  %v2852_v51 = vld [vmem:[#allocation5 + $0x158] sm:$0xff]  ;;  %v2849_v55 = vld [vmem:[#allocation5 + $0x140] sm:$0xff]  ;;  %v3022_v57 = vld [vmem:[#allocation5 + $0x1e8] sm:$0xff] }
 0x5fa   : > { %v2426_v5 = vsub.f32 %v2424_v59, %v2425_v58  ;;  %v2848_v58 = vld [vmem:[#allocation5 + $0x138] sm:$0xff]  ;;  %v3021_v59 = vld [vmem:[#allocation5 + $0x1e0] sm:$0xff] }
 0x5fc   : > { %v2428_v6 = vmax.f32 %v2426_v5, 0.0  ;;  %v2847_v5 = vld [vmem:[#allocation5 + $0x130] sm:$0xff] }
 0x5fe   : > { %v2429_v7 = vadd.f32 1e-05, %v2428_v6  ;;  %v3020_v6 = vld [vmem:[#allocation5 + $0x1d8] sm:$0xff] }
 0x600   : > { %3649 = vrsqrt.f32 %v2429_v7  ;;  %v2846_v7 = vld [vmem:[#allocation5 + $0x128] sm:$0xff] }
 0x60d   : > { %v3650_v47 = vpop.eup %3649 }
 0x60e   : > { %v2431_v61 = vmul.f32 %v3650_v47, %v2427_v60  ;;  %v3019_v60 = vld [vmem:[#allocation5 + $0x1d0] sm:$0xff]  ;;  %v3018_v47 = vld [vmem:[#allocation5 + $0x1c8] sm:$0xff] }
 0x610   : > { %vm2432_vm9 = vcmp.ge.f32.partialorder %v2431_v61, 0.0  ;;  %v2433_v62 = vmul.f32 0.01, %v2431_v61 }
 0x612   : > { %v4113_v2 = vsel %vm2432_vm9, %v2431_v61, %v2433_v62  ;;  %v2845_v61 = vld [vmem:[#allocation5 + $0x120] sm:$0xff] }
 0x613   : > { %3574 = vmatpush3.msra.mxu0 %v4113_v2  ;;  %3579 = vmatpush3.msra.mxu1 %v4113_v2  ;;  %v3017_v62 = vld [vmem:[#allocation5 + $0x1c0] sm:$0xff] }
 0x614   : > { %3581 = vmatmul.mubr.msk.f32.vlgmr.msra.gmra.mxu1 %vm1639_vm8, %v3285_v0  ;;  %3576 = vmatmul.mubr.msk.f32.vlgmr.msra.gmra.mxu0 %vm1639_vm8, %v2435_v1  ;;  %v2844_v0 = vld [vmem:[#allocation5 + $0x118] sm:$0xff] }
 0x615   : > { %2636 = vmatprep.subr.mxu0 %v2616_v3  ;;  %2710 = vmatprep.subr.mxu1 %v2524_v9  ;;  %v3016_v1 = vld [vmem:[#allocation5 + $0x1b8] sm:$0xff]  ;;  %v3015_v3 = vld [vmem:[#allocation5 + $0x1b0] sm:$0xff]  ;;  %v2842_v9 = vld [vmem:[#allocation5 + $0x108] sm:$0xff] }
 0x616   : > { %2637 = vmatpush1.msra.mxu0 %v2615_v10  ;;  %2711 = vmatpush1.msra.mxu1 %v2523_v11  ;;  %v3014_v10 = vld [vmem:[#allocation5 + $0x1a8] sm:$0xff]  ;;  %v2841_v11 = vld [vmem:[#allocation5 + $0x100] sm:$0xff] }
 0x617   : > { %2638 = vmatprep.subr.mxu0 %v2614_v12  ;;  %2712 = vmatprep.subr.mxu1 %v2522_v13  ;;  %v3013_v12 = vld [vmem:[#allocation5 + $0x1a0] sm:$0xff]  ;;  %v3011_v13 = vld [vmem:[#allocation5 + $0x190] sm:$0xff] }
 0x618   : > { %2639 = vmatpush1.msra.mxu0 %v2613_v14  ;;  %2713 = vmatpush1.msra.mxu1 %v2521_v15  ;;  %v3010_v14 = vld [vmem:[#allocation5 + $0x188] sm:$0xff]  ;;  %v3009_v15 = vld [vmem:[#allocation5 + $0x180] sm:$0xff] }
 0x619   : > { %2640 = vmatprep.subr.mxu0 %v2612_v16  ;;  %2714 = vmatprep.subr.mxu1 %v2520_v17  ;;  %v3101_v16 = vld [vmem:[%s4162_s7] sm:$0xf]  ;;  %v3743_v17 = vmov 0  }
 0x61a   : > { %2641 = vmatpush1.msra.mxu0 %v2611_v18  ;;  %2715 = vmatpush1.msra.mxu1 %v2519_v19 }
 0x61b   : > { %2642 = vmatprep.subr.mxu0 %v2610_v20  ;;  %2716 = vmatprep.subr.mxu1 %v2518_v21 }
 0x61c   : > { %2643 = vmatpush1.msra.mxu0 %v2609_v22  ;;  %2717 = vmatpush1.msra.mxu1 %v2517_v23 }
 0x61d   : > { %2644 = vmatprep.subr.mxu0 %v2608_v28  ;;  %2718 = vmatprep.subr.mxu1 %v2516_v29 }
 0x61e   : > { %2645 = vmatpush1.msra.mxu0 %v2607_v30  ;;  %2719 = vmatpush1.msra.mxu1 %v2515_v31 }
 0x61f   : > { %2646 = vmatprep.subr.mxu0 %v2606_v32  ;;  %2720 = vmatprep.subr.mxu1 %v2514_v33 }
 0x620   : > { %2647 = vmatpush1.msra.mxu0 %v2605_v34  ;;  %2721 = vmatpush1.msra.mxu1 %v2513_v35 }
 0x621   : > { %2648 = vmatprep.subr.mxu0 %v2604_v36  ;;  %2722 = vmatprep.subr.mxu1 %v2512_v37 }
 0x622   : > { %2649 = vmatpush1.msra.mxu0 %v2603_v38  ;;  %2723 = vmatpush1.msra.mxu1 %v2511_v39 }
 0x623   : > { %2650 = vmatprep.subr.mxu0 %v2602_v40  ;;  %2684 = vmatprep.mubr.f32.mxu0 %v3729_v8 }
 0x624   : > { %2651 = vmatpush1.msra.mxu0 %v2601_v41  ;;  %2758 = vmatprep.mubr.f32.mxu1 %v3729_v8 }
 0x625   : > { %3583 = vmatprep.subr.mxu0 %v3729_v8  ;;  %2724 = vmatprep.subr.mxu1 %v2510_v42 }
 0x626   : > { %2725 = vmatpush1.msra.mxu1 %v2509_v43  ;;  %3645 = vset.pattern.permute.xlu0 %v3743_v17 }
 0x627   : > { %2876 = vmatprep.subr.mxu1 %v2856_v44  ;;  %3104 = vperm.xlu0 %3645, %v3101_v16  }
 0x6a2   : > { %v3105_v36 = vpop.permute.xlu0 %3104 }
 0x6d4   : > { %v2596_v45 = vpop.f32.mrf.mxu1  ;;  %v2505_v46 = vpop.f32.mrf.mxu0 }
 0x6d5   : > { %3287 = vmatmul.mubr.msk.f32.vlgmr.msra.gmra.mxu0 %vm1587_vm5, %v2596_v45  ;;  %3288 = vmatmul.mubr.msk.f32.vlgmr.msra.gmra.mxu1 %vm1587_vm5, %v2505_v46 }
 0x6d6   : > { %3584 = vmatpush3.msra.mxu0 %v4113_v2  ;;  %v3582_v49 = vpop.f32.mrf.mxu1  ;;  %3585 = vmatprep.mubr.msk.f32.mxu0 %vm3734_vm2, %v3729_v8  ;;  %v3577_v50 = vpop.f32.mrf.mxu0 }
 0x6d7   : > { %3588 = vmatprep.subr.mxu0 %v3729_v8  ;;  %2877 = vmatpush1.msra.mxu1 %v2855_v48 }
 0x6d8   : > { %2878 = vmatprep.subr.mxu1 %v2854_v24  ;;  %2924 = vmatprep.mubr.f32.mxu1 %v3729_v8 }
 0x6d9   : > { %3586 = vmatmul.mubr.msk.f32.vlgmr.msra.gmra.mxu0 %vm1639_vm8, %v3289_v4  ;;  %2879 = vmatpush1.msra.mxu1 %v2853_v25 }
 0x6da   : > { %3589 = vmatpush3.msra.mxu0 %v4113_v2  ;;  %3590 = vmatprep.mubr.msk.f32.mxu0 %vm3734_vm2, %v3729_v8  ;;  %v2843_v2 = vld [vmem:[#allocation5 + $0x110] sm:$0xff] }
 0x6db   : > { %2880 = vmatprep.subr.mxu1 %v2852_v51  ;;  %3044 = vmatprep.subr.mxu0 %v3024_v26 }
 0x6dc   : > { %2881 = vmatpush1.msra.mxu1 %v2851_v27 }
 0x6dd   : > { %3591 = vmatmul.mubr.msk.f32.vlgmr.msra.gmra.mxu0 %vm1639_vm8, %v3292_v52  ;;  %2882 = vmatprep.subr.mxu1 %v2850_v53 }
 0x6de   : > { %3045 = vmatpush1.msra.mxu0 %v3023_v54  ;;  %2883 = vmatpush1.msra.mxu1 %v2849_v55 }
 0x6df   : > { %3046 = vmatprep.subr.mxu0 %v3022_v57  ;;  %2884 = vmatprep.subr.mxu1 %v2848_v58 }
 0x6e0   : > { %3047 = vmatpush1.msra.mxu0 %v3021_v59  ;;  %2885 = vmatpush1.msra.mxu1 %v2847_v5 }
 0x6e1   : > { %3048 = vmatprep.subr.mxu0 %v3020_v6  ;;  %2886 = vmatprep.subr.mxu1 %v2846_v7 }
 0x6e2   : > { %3049 = vmatpush1.msra.mxu0 %v3019_v60  ;;  %3092 = vmatprep.mubr.f32.mxu0 %v3729_v8  ;;  %v3012_v8 = vld [vmem:[#allocation5 + $0x198] sm:$0xff] }
 0x6e3   : > { %3050 = vmatprep.subr.mxu0 %v3018_v47  ;;  %2887 = vmatpush1.msra.mxu1 %v2845_v61 }
 0x6e4   : > { %3051 = vmatpush1.msra.mxu0 %v3017_v62  ;;  %2888 = vmatprep.subr.mxu1 %v2844_v0 }
 0x6e5   : > { %3052 = vmatprep.subr.mxu0 %v3016_v1  ;;  %2889 = vmatpush1.msra.mxu1 %v2843_v2 }
 0x6e6   : > { %3053 = vmatpush1.msra.mxu0 %v3015_v3  ;;  %2890 = vmatprep.subr.mxu1 %v2842_v9 }
 0x6e7   : > { %3054 = vmatprep.subr.mxu0 %v3014_v10  ;;  %2891 = vmatpush1.msra.mxu1 %v2841_v11 }
 0x6e8   : > { %3055 = vmatpush1.msra.mxu0 %v3013_v12 }
 0x6e9   : > { %3056 = vmatprep.subr.mxu0 %v3012_v8 }
 0x6ea   : > { %3057 = vmatpush1.msra.mxu0 %v3011_v13 }
 0x6eb   : > { %3058 = vmatprep.subr.mxu0 %v3010_v14 }
 0x6ec   : > { %3059 = vmatpush1.msra.mxu0 %v3009_v15 }
 0x795   : > { %v2686_v18 = vpop.f32.mrf.mxu0  ;;  %v2760_v28 = vpop.f32.mrf.mxu1 }
 0x796   : > { %v2761_v31 = vadd.f32 %v2760_v28, %v2686_v18 }
 0x797   : > { %v2688_v19 = vpop.f32.mrf.mxu0  ;;  %v2762_v29 = vpop.f32.mrf.mxu1 }
 0x798   : > { %v2763_v33 = vadd.f32 %v2762_v29, %v2688_v19 }
 0x799   : > { %v2836_v20 = vpop.f32.mrf.mxu0 }
 0x79a   : > { %3291 = vmatmul.mubr.msk.f32.vlgmr.msra.gmra.mxu1 %vm1587_vm5, %v2836_v20 }
 0x79b   : > { %v3587_v21 = vpop.f32.mrf.mxu0 }
 0x79d   : > { %v3004_v22 = vpop.f32.mrf.mxu0 }
 0x79e   : > { %3294 = vmatmul.mubr.msk.f32.vlgmr.msra.gmra.mxu0 %vm1587_vm5, %v3004_v22 }
 0x79f   : > { %v3592_v23 = vpop.f32.mrf.mxu0 }
 0x85a   : > { %v2926_v30 = vpop.f32.mrf.mxu1 }
 0x85b   : > { %v2931_v34 = vadd.f32 %v2926_v30, %v2761_v31 }
 0x85c   : > { %v2928_v32 = vpop.f32.mrf.mxu1 }
 0x85d   : > { %v2932_v37 = vadd.f32 %v2928_v32, %v2763_v33 }
 0x85e   : > { %v3094_v35 = vpop.f32.mrf.mxu0 }
 0x85f   : > { %v3099_v38 = vadd.f32 %v3094_v35, %v2931_v34 }
 0x860   : > { %v3096_v39 = vpop.f32.mrf.mxu0 }
 0x861   : > { %v3107_v40 = vadd.f32 %v3105_v36, %v3099_v38  ;;  %v3100_v41 = vadd.f32 %v3096_v39, %v2932_v37 }
 0x863   : > { %v3111_v42 = vrot.slane %v3107_v40, 4  ;;  %v3108_v43 = vadd.f32 %v3105_v36, %v3100_v41 }
 0x865   : > { %3115 = vst [vmem:[%s335_s21] sm:$0xf0] %v3111_v42  ;;  %v3112_v56 = vrot.slane %v3108_v43, 4 }
 0x867   : > { %3116 = vst [vmem:[%s335_s21 + $0x8] sm:$0xf0] %v3112_v56 }
 0x868 PF: > { %s20_s27 = sadd.s32 1, %s3717_s27  }
 0x869   : > { %p17_p3 = scmp.ge.s32.totalorder %s20_s27, 4  }
 0x86b   :  { %19 = sbr.rel (!%p17_p3) target bundleno = 2 (0x2), region = 124 }
 0x870   :  { %3138 = vsyncpa [#allocation4], 1 }
 0x871   :  { %3140 = vsyncpa [#allocation4 + $0x1], 1 }
 0x872   :  { %3141 = vsyncpa [#allocation6], 1 }

</bundles_post_ra>
